<compile_context>
chip_gen: v7x
topology: tpu7x:2x2x1
jax: 0.10.0
libtpu: 0.0.40
codegen_flags: <defaults>
</compile_context>

<pallas_src>
import functools

import jax
import jax.numpy as jnp
from jax.experimental import pallas as pl
from jax.experimental.pallas import tpu as pltpu

TAU = 2.0
V_TH = 1.0
BN_EPS = 1e-5
N_TAPS = 4  # positions of the 2x2 pooling window


# ----------------------------- fused block kernel -----------------------------

def _make_fused_kernel(time_varying, mean_output, inv_t):
    """Fused conv-GEMM + BN shift + LIF + 2x2 maxpool kernel. Grid = (row_tiles, T)."""

    def kernel(p_ref, w_ref, shift_ref, o_ref, v_ref, *maybe_cache):
        t = pl.program_id(1)
        rows = v_ref.shape[0]                  # N_TAPS * tq
        tq = rows // N_TAPS
        k_dim = p_ref.shape[-1]

        @pl.when(t == 0)
        def _init():
            v_ref[...] = jnp.zeros_like(v_ref)
            if mean_output:
                o_ref[...] = jnp.zeros_like(o_ref)
            if not time_varying:
                # Input constant over T: single packed conv GEMM + folded shift,
                # computed once and cached in bf16 VMEM for all timesteps.
                cache = maybe_cache[0]
                patches = p_ref[...].reshape(rows, k_dim)      # (4,tq,K)->(4tq,K)
                cache[...] = (jnp.dot(patches, w_ref[...],
                                      preferred_element_type=jnp.float32)
                              + shift_ref[...]).astype(jnp.bfloat16)

        if time_varying:
            patches = p_ref[0].reshape(rows, k_dim)            # (4,tq,K)->(4tq,K)
            x = jnp.dot(patches, w_ref[...],
                        preferred_element_type=jnp.float32) + shift_ref[...]
        else:
            x = maybe_cache[0][...].astype(jnp.float32)

        # LIF: charge (decay_input, v_reset=0), Heaviside spike, hard reset.
        v = v_ref[...]
        h = v + (x - v) * (1.0 / TAU)
        fired = h >= V_TH
        v_ref[...] = jnp.where(fired, 0.0, h)

        # 2x2 max-pool over 0/1 spikes == logical OR of the four tap row groups.
        pooled = jnp.logical_or(
            jnp.logical_or(fired[0 * tq:1 * tq], fired[1 * tq:2 * tq]),
            jnp.logical_or(fired[2 * tq:3 * tq], fired[3 * tq:4 * tq]))

        if mean_output:
            o_ref[...] += pooled.astype(jnp.float32)           # raw spike count

            @pl.when(t == pl.num_programs(1) - 1)
            def _finish():
                o_ref[...] *= inv_t                            # scale once at the end
        else:
            o_ref[0] = pooled.astype(o_ref.dtype)

    return kernel


# ------------------------------- XLA-side glue -------------------------------

def _pool_tap_patches(x):
    """x [B, H, W, C] -> list of 4 tap patch tensors [B, H//2, W//2, 9*C].

    Tap (hr, wr) holds the 3x3 im2col patches of the full-resolution conv output
    positions that land in slot (hr, wr) of each 2x2 pooling window.
    Column order is (kh, kw, cin), matching the HWIO weight reshape.
    TODO(synk): at large batch, build patches in-kernel from a halo'd spike tile
                instead (avoids the ~9x im2col HBM expansion; key lever on v5e).
    """
    B, H, W, C = x.shape
    Ho, Wo = H // 2, W // 2
    xp = jnp.pad(x, ((0, 0), (1, 1), (1, 1), (0, 0)))
    taps = []
    for hr in range(2):
        for wr in range(2):
            cols = [xp[:, hr + dh::2, wr + dw::2, :][:, :Ho, :Wo, :]
                    for dh in range(3) for dw in range(3)]
            taps.append(jnp.concatenate(cols, axis=-1))
    return taps


def _row_tile(q, k_dim, cout, time_varying):
    """Pick the row tile: multiple of 8 (prefer 16) dividing q, capped at q//2
    so the parallel grid axis has >= 2 tiles when q allows (v7x megacore), and
    sized against a ~24 MiB VMEM budget (safe for v7x's 32 MiB scoped default)."""
    budget = 24 << 20

    def vmem_bytes(tq):
        taps = 2 * N_TAPS * tq * k_dim * 2          # double-buffered bf16 tap block
        memb = N_TAPS * tq * cout * 4               # f32 membrane scratch
        cache = 0 if time_varying else N_TAPS * tq * cout * 2   # bf16 conv cache
        outb = 2 * tq * cout * 4                    # double-buffered output block
        wts = k_dim * cout * 2 + cout * 4
        return taps + memb + cache + outb + wts

    cap = max(q // 2, 8) if q >= 16 else q
    best = None
    for tq in range(8, min(cap, 512) + 1, 8):
        if q % tq or vmem_bytes(tq) > budget:
            continue
        if best is None:
            best = tq
            continue
        best16, tq16 = best % 16 == 0, tq % 16 == 0
        if (tq16 and not best16) or (tq16 == best16 and tq > best):
            best = tq
    return best if best is not None else q


def fused_conv_bn_lif_pool(x_bhwc, w_hwio, bias, gamma, beta, rmean, rvar, *,
                           t_steps, time_varying, mean_output):
    """One Conv(3x3,p=1)+BN+LIF+MaxPool(2x2) block as a single pallas_call.

    time_varying=False: x_bhwc is [N, H, W, Cin] shared by all T timesteps.
    time_varying=True : x_bhwc is [T*N, H, W, Cin] (t major).
    Returns spikes [T, N*Ho*Wo, Cout] (bf16), or the time-mean pooled output
    [N*Ho*Wo, Cout] (f32) when mean_output=True.
    """
    B, H, W, Cin = x_bhwc.shape
    Ho, Wo = H // 2, W // 2
    Cout = w_hwio.shape[-1]
    K = 9 * Cin

    # Fold eval-mode BN scale into the weights and (bias, BN shift) into one add.
    scale = gamma / jnp.sqrt(rvar + BN_EPS)
    shift = (beta + (bias - rmean) * scale).astype(jnp.float32).reshape(1, Cout)
    w_mat = (w_hwio.reshape(K, Cout) * scale[None, :]).astype(jnp.bfloat16)

    # Pack the 4 pooling-tap patch operands into ONE array -> one GEMM + one
    # tap DMA per grid step inside the kernel.
    taps = _pool_tap_patches(x_bhwc.astype(jnp.bfloat16))
    if time_varying:
        q = (B // t_steps) * Ho * Wo                         # pooled rows / timestep
        packed = jnp.stack([p.reshape(t_steps, q, K) for p in taps], axis=1)
    else:
        q = B * Ho * Wo
        packed = jnp.stack([p.reshape(q, K) for p in taps], axis=0)

    tq = _row_tile(q, K, Cout, time_varying)                 # multiple of 8 for all
                                                             # shapes used here
    if time_varying:
        p_spec = pl.BlockSpec((1, N_TAPS, tq, K), lambda j, t: (t, 0, j, 0))
    else:
        p_spec = pl.BlockSpec((N_TAPS, tq, K), lambda j, t: (0, j, 0))
    w_spec = pl.BlockSpec((K, Cout), lambda j, t: (0, 0))
    s_spec = pl.BlockSpec((1, Cout), lambda j, t: (0, 0))

    if mean_output:
        out_shape = jax.ShapeDtypeStruct((q, Cout), jnp.float32)
        out_spec = pl.BlockSpec((tq, Cout), lambda j, t: (j, 0))     # resident over T
    else:
        out_shape = jax.ShapeDtypeStruct((t_steps, q, Cout), jnp.bfloat16)
        out_spec = pl.BlockSpec((1, tq, Cout), lambda j, t: (t, j, 0))

    scratch = [pltpu.VMEM((N_TAPS * tq, Cout), jnp.float32)]         # LIF membrane
    if not time_varying:
        scratch.append(pltpu.VMEM((N_TAPS * tq, Cout), jnp.bfloat16))  # conv+shift cache

    gemm_steps = t_steps if time_varying else 1
    flops = 2 * N_TAPS * q * K * Cout * gemm_steps
    bytes_accessed = (packed.size * 2 + w_mat.size * 2 + shift.size * 4
                      + (q * Cout * 4 if mean_output else t_steps * q * Cout * 2))

    kernel = _make_fused_kernel(time_varying, mean_output, 1.0 / t_steps)
    return pl.pallas_call(
        kernel,
        out_shape=out_shape,
        grid=(q // tq, t_steps),
        in_specs=[p_spec, w_spec, s_spec],
        out_specs=out_spec,
        scratch_shapes=scratch,
        compiler_params=pltpu.CompilerParams(
            dimension_semantics=("parallel", "arbitrary"),
            vmem_limit_bytes=32 * 1024 * 1024),
        cost_estimate=pl.CostEstimate(flops=flops, transcendentals=0,
                                      bytes_accessed=bytes_accessed),
    )(packed, w_mat, shift)


def cnn_forward(x_nchw, params, T=8):
    N, _, H, W = x_nchw.shape
    x = jnp.transpose(x_nchw, (0, 2, 3, 1)).astype(jnp.float32)         # NHWC

    # Block 1: input constant over T -> conv GEMM hoisted inside the kernel.
    spk = fused_conv_bn_lif_pool(x, *params[0], t_steps=T,
                                 time_varying=False, mean_output=False)
    H, W, C = H // 2, W // 2, params[0][0].shape[-1]
    x_seq = spk.reshape(T * N, H, W, C)

    # Block 2.
    spk = fused_conv_bn_lif_pool(x_seq, *params[1], t_steps=T,
                                 time_varying=True, mean_output=False)
    H, W, C = H // 2, W // 2, params[1][0].shape[-1]
    x_seq = spk.reshape(T * N, H, W, C)

    # Block 3: mean over T accumulated inside the kernel.
    feat = fused_conv_bn_lif_pool(x_seq, *params[2], t_steps=T,
                                  time_varying=True, mean_output=True)
    H, W, C = H // 2, W // 2, params[2][0].shape[-1]
    # Flatten exactly like nn.Flatten on an NCHW tensor: (C, H, W) order.
    return feat.reshape(N, H, W, C).transpose(0, 3, 1, 2).reshape(N, C * H * W)


def init_params(key):
    chans = [(3, 32), (32, 32), (32, 64)]
    params = []
    for li, (cin, cout) in enumerate(chans):
        k = jax.random.fold_in(key, li)
        kw, kb, kg, kbe, km, kv = jax.random.split(k, 6)
        w = jax.random.normal(kw, (3, 3, cin, cout), jnp.float32) * 0.1   # HWIO
        b = jax.random.normal(kb, (cout,), jnp.float32) * 0.05
        gamma = 1.0 + 0.1 * jax.random.normal(kg, (cout,), jnp.float32)
        beta = 0.1 * jax.random.normal(kbe, (cout,), jnp.float32)
        rmean = 0.05 * jax.random.normal(km, (cout,), jnp.float32)
        rvar = 1.0 + 0.1 * jnp.abs(jax.random.normal(kv, (cout,), jnp.float32))
        params.append((w, b, gamma, beta, rmean, rvar))
    return params


if __name__ == "__main__":
    key = jax.random.PRNGKey(0)
    pkey, xkey = jax.random.split(key)
    params = init_params(pkey)
    x = jax.random.normal(xkey, (2, 3, 16, 16), jnp.float32)   # NCHW, like the PyTorch module
    fwd = jax.jit(functools.partial(cnn_forward, T=8))
    out = fwd(x, params)
    jax.block_until_ready(out)
    assert out.shape == (2, 64 * 2 * 2)
    print("KERNEL_OK")
</pallas_src>

<mosaic_0001>
module attributes {stable_mosaic.version = 11 : i64} {
  func.func @kernel(%arg0: i32, %arg1: i32, %arg2: memref<4x64x27xbf16, #tpu.memory_space<vmem>>, %arg3: memref<27x32xbf16, #tpu.memory_space<vmem>>, %arg4: memref<1x32xf32, #tpu.memory_space<vmem>>, %arg5: memref<1x64x32xbf16, #tpu.memory_space<vmem>>, %arg6: memref<256x32xf32, #tpu.memory_space<vmem>>, %arg7: memref<256x32xbf16, #tpu.memory_space<vmem>>) attributes {dimension_semantics = [#tpu.dimension_semantics<parallel>, #tpu.dimension_semantics<arbitrary>], iteration_bounds = array<i64: 2, 8>, scalar_prefetch = 0 : i64, scratch_operands = 2 : i64, tpu.core_type = #tpu.core_type<tc>, window_params = [{transform_indices = @transform_0, window_bounds = array<i64: 4, 64, 27>}, {pipeline_mode = #tpu.pipeline_mode<synchronous>, transform_indices = @transform_1, window_bounds = array<i64: 27, 32>}, {pipeline_mode = #tpu.pipeline_mode<synchronous>, transform_indices = @transform_2, window_bounds = array<i64: 1, 32>}, {transform_indices = @transform_3, window_bounds = array<i64: 1, 64, 32>}]} {
    %c0_i32 = arith.constant 0 : i32
    %0 = arith.cmpi eq, %arg1, %c0_i32 : i32
    %1 = arith.extui %0 : i1 to i32
    %c0_i32_0 = arith.constant 0 : i32
    %2 = arith.cmpi ne, %1, %c0_i32_0 : i32
    scf.if %2 {
      %cst_11 = arith.constant 0.000000e+00 : f32
      %28 = vector.broadcast %cst_11 : f32 to vector<256x32xf32>
      %c0_12 = arith.constant 0 : index
      %c0_13 = arith.constant 0 : index
      %29 = vector.load %arg6[%c0_12, %c0_13] : memref<256x32xf32, #tpu.memory_space<vmem>>, vector<256x32xf32>
      tpu.vector_store %arg6[%c0_12, %c0_13], %28 {strides = array<i32>} : memref<256x32xf32, #tpu.memory_space<vmem>>, vector<256x32xf32>,
      %c0_14 = arith.constant 0 : index
      %c0_15 = arith.constant 0 : index
      %c0_16 = arith.constant 0 : index
      %30 = vector.load %arg2[%c0_14, %c0_15, %c0_16] : memref<4x64x27xbf16, #tpu.memory_space<vmem>>, vector<4x64x27xbf16>
      %31 = vector.shape_cast %30 : vector<4x64x27xbf16> to vector<256x27xbf16>
      %c0_17 = arith.constant 0 : index
      %c0_18 = arith.constant 0 : index
      %32 = vector.load %arg3[%c0_17, %c0_18] : memref<27x32xbf16, #tpu.memory_space<vmem>>, vector<27x32xbf16>
      %cst_19 = arith.constant dense<0.000000e+00> : vector<256x32xf32>
      %33 = tpu.matmul %31, %32, %cst_19 {dimension_numbers = #tpu.dot_dimension_numbers<[1], [0], [0], [1], [0, 0, 1, 1], [], []>} : vector<256x27xbf16>, vector<27x32xbf16>, vector<256x32xf32> -> vector<256x32xf32>
      %c0_20 = arith.constant 0 : index
      %c0_21 = arith.constant 0 : index
      %34 = vector.load %arg4[%c0_20, %c0_21] : memref<1x32xf32, #tpu.memory_space<vmem>>, vector<1x32xf32>
      %35 = vector.broadcast %34 : vector<1x32xf32> to vector<256x32xf32>
      %36 = arith.addf %33, %35 : vector<256x32xf32>
      %37 = arith.truncf %36 : vector<256x32xf32> to vector<256x32xbf16>
      %c0_22 = arith.constant 0 : index
      %c0_23 = arith.constant 0 : index
      %38 = vector.load %arg7[%c0_22, %c0_23] : memref<256x32xbf16, #tpu.memory_space<vmem>>, vector<256x32xbf16>
      tpu.vector_store %arg7[%c0_22, %c0_23], %37 {strides = array<i32>} : memref<256x32xbf16, #tpu.memory_space<vmem>>, vector<256x32xbf16>,
    } else {
    }
    %c0 = arith.constant 0 : index
    %c0_1 = arith.constant 0 : index
    %3 = vector.load %arg7[%c0, %c0_1] : memref<256x32xbf16, #tpu.memory_space<vmem>>, vector<256x32xbf16>
    %4 = arith.extf %3 : vector<256x32xbf16> to vector<256x32xf32>
    %c0_2 = arith.constant 0 : index
    %c0_3 = arith.constant 0 : index
    %5 = vector.load %arg6[%c0_2, %c0_3] : memref<256x32xf32, #tpu.memory_space<vmem>>, vector<256x32xf32>
    %6 = arith.subf %4, %5 : vector<256x32xf32>
    %cst = arith.constant 5.000000e-01 : f32
    %7 = vector.broadcast %cst : f32 to vector<256x32xf32>
    %8 = arith.mulf %6, %7 : vector<256x32xf32>
    %9 = arith.addf %5, %8 : vector<256x32xf32>
    %cst_4 = arith.constant 1.000000e+00 : f32
    %10 = vector.broadcast %cst_4 : f32 to vector<256x32xf32>
    %11 = arith.cmpf oge, %9, %10 : vector<256x32xf32>
    %cst_5 = arith.constant 0.000000e+00 : f32
    %12 = vector.broadcast %cst_5 : f32 to vector<256x32xf32>
    %13 = arith.select %11, %12, %9 : vector<256x32xi1>, vector<256x32xf32>
    %c0_6 = arith.constant 0 : index
    %c0_7 = arith.constant 0 : index
    %14 = vector.load %arg6[%c0_6, %c0_7] : memref<256x32xf32, #tpu.memory_space<vmem>>, vector<256x32xf32>
    tpu.vector_store %arg6[%c0_6, %c0_7], %13 {strides = array<i32>} : memref<256x32xf32, #tpu.memory_space<vmem>>, vector<256x32xf32>,
    %15 = vector.extract_strided_slice %11 {offsets = [0, 0], sizes = [64, 32], strides = [1, 1]} : vector<256x32xi1> to vector<64x32xi1>
    %16 = vector.extract_strided_slice %11 {offsets = [64, 0], sizes = [64, 32], strides = [1, 1]} : vector<256x32xi1> to vector<64x32xi1>
    %17 = arith.ori %15, %16 : vector<64x32xi1>
    %18 = vector.extract_strided_slice %11 {offsets = [128, 0], sizes = [64, 32], strides = [1, 1]} : vector<256x32xi1> to vector<64x32xi1>
    %19 = vector.extract_strided_slice %11 {offsets = [192, 0], sizes = [64, 32], strides = [1, 1]} : vector<256x32xi1> to vector<64x32xi1>
    %20 = arith.ori %18, %19 : vector<64x32xi1>
    %21 = arith.ori %17, %20 : vector<64x32xi1>
    %22 = arith.extui %21 : vector<64x32xi1> to vector<64x32xi32>
    %23 = arith.sitofp %22 : vector<64x32xi32> to vector<64x32xf32>
    %24 = arith.truncf %23 : vector<64x32xf32> to vector<64x32xbf16>
    %c0_8 = arith.constant 0 : index
    %c0_9 = arith.constant 0 : index
    %c0_10 = arith.constant 0 : index
    %25 = vector.load %arg5[%c0_8, %c0_9, %c0_10] : memref<1x64x32xbf16, #tpu.memory_space<vmem>>, vector<1x64x32xbf16>
    %26 = vector.shape_cast %25 : vector<1x64x32xbf16> to vector<64x32xbf16>
    %27 = vector.shape_cast %24 : vector<64x32xbf16> to vector<1x64x32xbf16>
    tpu.vector_store %arg5[%c0_8, %c0_9, %c0_10], %27 {strides = array<i32>} : memref<1x64x32xbf16, #tpu.memory_space<vmem>>, vector<1x64x32xbf16>,
    return
  }
  func.func @transform_0(%arg0: i32, %arg1: i32) -> (i32, i32, i32) {
    %c0_i32 = arith.constant 0 : i32
    %c0_i32_0 = arith.constant 0 : i32
    %c0_i32_1 = arith.constant 0 : i32
    return %c0_i32, %arg0, %c0_i32_0 : i32, i32, i32
  }
  func.func @transform_1(%arg0: i32, %arg1: i32) -> (i32, i32) {
    %c0_i32 = arith.constant 0 : i32
    %c0_i32_0 = arith.constant 0 : i32
    %c0_i32_1 = arith.constant 0 : i32
    return %c0_i32, %c0_i32_0 : i32, i32
  }
  func.func @transform_2(%arg0: i32, %arg1: i32) -> (i32, i32) {
    %c0_i32 = arith.constant 0 : i32
    %c0_i32_0 = arith.constant 0 : i32
    %c0_i32_1 = arith.constant 0 : i32
    return %c0_i32, %c0_i32_0 : i32, i32
  }
  func.func @transform_3(%arg0: i32, %arg1: i32) -> (i32, i32, i32) {
    %c0_i32 = arith.constant 0 : i32
    %c0_i32_0 = arith.constant 0 : i32
    return %arg1, %arg0, %c0_i32 : i32, i32, i32
  }
}

module attributes {stable_mosaic.version = 11 : i64} {
  func.func @kernel(%arg0: i32, %arg1: i32, %arg2: memref<1x4x16x288xbf16, #tpu.memory_space<vmem>>, %arg3: memref<288x32xbf16, #tpu.memory_space<vmem>>, %arg4: memref<1x32xf32, #tpu.memory_space<vmem>>, %arg5: memref<1x16x32xbf16, #tpu.memory_space<vmem>>, %arg6: memref<64x32xf32, #tpu.memory_space<vmem>>) attributes {dimension_semantics = [#tpu.dimension_semantics<parallel>, #tpu.dimension_semantics<arbitrary>], iteration_bounds = array<i64: 2, 8>, scalar_prefetch = 0 : i64, scratch_operands = 1 : i64, tpu.core_type = #tpu.core_type<tc>, window_params = [{transform_indices = @transform_0, window_bounds = array<i64: 1, 4, 16, 288>}, {pipeline_mode = #tpu.pipeline_mode<synchronous>, transform_indices = @transform_1, window_bounds = array<i64: 288, 32>}, {pipeline_mode = #tpu.pipeline_mode<synchronous>, transform_indices = @transform_2, window_bounds = array<i64: 1, 32>}, {transform_indices = @transform_3, window_bounds = array<i64: 1, 16, 32>}]} {
    %c0_i32 = arith.constant 0 : i32
    %0 = arith.cmpi eq, %arg1, %c0_i32 : i32
    %1 = arith.extui %0 : i1 to i32
    %c0_i32_0 = arith.constant 0 : i32
    %2 = arith.cmpi ne, %1, %c0_i32_0 : i32
    scf.if %2 {
      %cst_18 = arith.constant 0.000000e+00 : f32
      %34 = vector.broadcast %cst_18 : f32 to vector<64x32xf32>
      %c0_19 = arith.constant 0 : index
      %c0_20 = arith.constant 0 : index
      %35 = vector.load %arg6[%c0_19, %c0_20] : memref<64x32xf32, #tpu.memory_space<vmem>>, vector<64x32xf32>
      tpu.vector_store %arg6[%c0_19, %c0_20], %34 {strides = array<i32>} : memref<64x32xf32, #tpu.memory_space<vmem>>, vector<64x32xf32>,
    } else {
    }
    %c0 = arith.constant 0 : index
    %c0_1 = arith.constant 0 : index
    %c0_2 = arith.constant 0 : index
    %c0_3 = arith.constant 0 : index
    %3 = vector.load %arg2[%c0, %c0_1, %c0_2, %c0_3] : memref<1x4x16x288xbf16, #tpu.memory_space<vmem>>, vector<1x4x16x288xbf16>
    %4 = vector.shape_cast %3 : vector<1x4x16x288xbf16> to vector<4x16x288xbf16>
    %5 = vector.shape_cast %4 : vector<4x16x288xbf16> to vector<64x288xbf16>
    %c0_4 = arith.constant 0 : index
    %c0_5 = arith.constant 0 : index
    %6 = vector.load %arg3[%c0_4, %c0_5] : memref<288x32xbf16, #tpu.memory_space<vmem>>, vector<288x32xbf16>
    %cst = arith.constant dense<0.000000e+00> : vector<64x32xf32>
    %7 = tpu.matmul %5, %6, %cst {dimension_numbers = #tpu.dot_dimension_numbers<[1], [0], [0], [1], [0, 0, 1, 1], [], []>} : vector<64x288xbf16>, vector<288x32xbf16>, vector<64x32xf32> -> vector<64x32xf32>
    %c0_6 = arith.constant 0 : index
    %c0_7 = arith.constant 0 : index
    %8 = vector.load %arg4[%c0_6, %c0_7] : memref<1x32xf32, #tpu.memory_space<vmem>>, vector<1x32xf32>
    %9 = vector.broadcast %8 : vector<1x32xf32> to vector<64x32xf32>
    %10 = arith.addf %7, %9 : vector<64x32xf32>
    %c0_8 = arith.constant 0 : index
    %c0_9 = arith.constant 0 : index
    %11 = vector.load %arg6[%c0_8, %c0_9] : memref<64x32xf32, #tpu.memory_space<vmem>>, vector<64x32xf32>
    %12 = arith.subf %10, %11 : vector<64x32xf32>
    %cst_10 = arith.constant 5.000000e-01 : f32
    %13 = vector.broadcast %cst_10 : f32 to vector<64x32xf32>
    %14 = arith.mulf %12, %13 : vector<64x32xf32>
    %15 = arith.addf %11, %14 : vector<64x32xf32>
    %cst_11 = arith.constant 1.000000e+00 : f32
    %16 = vector.broadcast %cst_11 : f32 to vector<64x32xf32>
    %17 = arith.cmpf oge, %15, %16 : vector<64x32xf32>
    %cst_12 = arith.constant 0.000000e+00 : f32
    %18 = vector.broadcast %cst_12 : f32 to vector<64x32xf32>
    %19 = arith.select %17, %18, %15 : vector<64x32xi1>, vector<64x32xf32>
    %c0_13 = arith.constant 0 : index
    %c0_14 = arith.constant 0 : index
    %20 = vector.load %arg6[%c0_13, %c0_14] : memref<64x32xf32, #tpu.memory_space<vmem>>, vector<64x32xf32>
    tpu.vector_store %arg6[%c0_13, %c0_14], %19 {strides = array<i32>} : memref<64x32xf32, #tpu.memory_space<vmem>>, vector<64x32xf32>,
    %21 = vector.extract_strided_slice %17 {offsets = [0, 0], sizes = [16, 32], strides = [1, 1]} : vector<64x32xi1> to vector<16x32xi1>
    %22 = vector.extract_strided_slice %17 {offsets = [16, 0], sizes = [16, 32], strides = [1, 1]} : vector<64x32xi1> to vector<16x32xi1>
    %23 = arith.ori %21, %22 : vector<16x32xi1>
    %24 = vector.extract_strided_slice %17 {offsets = [32, 0], sizes = [16, 32], strides = [1, 1]} : vector<64x32xi1> to vector<16x32xi1>
    %25 = vector.extract_strided_slice %17 {offsets = [48, 0], sizes = [16, 32], strides = [1, 1]} : vector<64x32xi1> to vector<16x32xi1>
    %26 = arith.ori %24, %25 : vector<16x32xi1>
    %27 = arith.ori %23, %26 : vector<16x32xi1>
    %28 = arith.extui %27 : vector<16x32xi1> to vector<16x32xi32>
    %29 = arith.sitofp %28 : vector<16x32xi32> to vector<16x32xf32>
    %30 = arith.truncf %29 : vector<16x32xf32> to vector<16x32xbf16>
    %c0_15 = arith.constant 0 : index
    %c0_16 = arith.constant 0 : index
    %c0_17 = arith.constant 0 : index
    %31 = vector.load %arg5[%c0_15, %c0_16, %c0_17] : memref<1x16x32xbf16, #tpu.memory_space<vmem>>, vector<1x16x32xbf16>
    %32 = vector.shape_cast %31 : vector<1x16x32xbf16> to vector<16x32xbf16>
    %33 = vector.shape_cast %30 : vector<16x32xbf16> to vector<1x16x32xbf16>
    tpu.vector_store %arg5[%c0_15, %c0_16, %c0_17], %33 {strides = array<i32>} : memref<1x16x32xbf16, #tpu.memory_space<vmem>>, vector<1x16x32xbf16>,
    return
  }
  func.func @transform_0(%arg0: i32, %arg1: i32) -> (i32, i32, i32, i32) {
    %c0_i32 = arith.constant 0 : i32
    %c0_i32_0 = arith.constant 0 : i32
    %c0_i32_1 = arith.constant 0 : i32
    return %arg1, %c0_i32, %arg0, %c0_i32_0 : i32, i32, i32, i32
  }
  func.func @transform_1(%arg0: i32, %arg1: i32) -> (i32, i32) {
    %c0_i32 = arith.constant 0 : i32
    %c0_i32_0 = arith.constant 0 : i32
    %c0_i32_1 = arith.constant 0 : i32
    return %c0_i32, %c0_i32_0 : i32, i32
  }
  func.func @transform_2(%arg0: i32, %arg1: i32) -> (i32, i32) {
    %c0_i32 = arith.constant 0 : i32
    %c0_i32_0 = arith.constant 0 : i32
    %c0_i32_1 = arith.constant 0 : i32
    return %c0_i32, %c0_i32_0 : i32, i32
  }
  func.func @transform_3(%arg0: i32, %arg1: i32) -> (i32, i32, i32) {
    %c0_i32 = arith.constant 0 : i32
    %c0_i32_0 = arith.constant 0 : i32
    return %arg1, %arg0, %c0_i32 : i32, i32, i32
  }
}

module attributes {stable_mosaic.version = 11 : i64} {
  func.func @kernel(%arg0: i32, %arg1: i32, %arg2: memref<1x4x8x288xbf16, #tpu.memory_space<vmem>>, %arg3: memref<288x64xbf16, #tpu.memory_space<vmem>>, %arg4: memref<1x64xf32, #tpu.memory_space<vmem>>, %arg5: memref<8x64xf32, #tpu.memory_space<vmem>>, %arg6: memref<32x64xf32, #tpu.memory_space<vmem>>) attributes {dimension_semantics = [#tpu.dimension_semantics<parallel>, #tpu.dimension_semantics<arbitrary>], iteration_bounds = array<i64: 1, 8>, scalar_prefetch = 0 : i64, scratch_operands = 1 : i64, tpu.core_type = #tpu.core_type<tc>, window_params = [{transform_indices = @transform_0, window_bounds = array<i64: 1, 4, 8, 288>}, {pipeline_mode = #tpu.pipeline_mode<synchronous>, transform_indices = @transform_1, window_bounds = array<i64: 288, 64>}, {pipeline_mode = #tpu.pipeline_mode<synchronous>, transform_indices = @transform_2, window_bounds = array<i64: 1, 64>}, {transform_indices = @transform_3, window_bounds = array<i64: 8, 64>}]} {
    %c0_i32 = arith.constant 0 : i32
    %0 = arith.cmpi eq, %arg1, %c0_i32 : i32
    %1 = arith.extui %0 : i1 to i32
    %c0_i32_0 = arith.constant 0 : i32
    %2 = arith.cmpi ne, %1, %c0_i32_0 : i32
    scf.if %2 {
      %cst_20 = arith.constant 0.000000e+00 : f32
      %36 = vector.broadcast %cst_20 : f32 to vector<32x64xf32>
      %c0_21 = arith.constant 0 : index
      %c0_22 = arith.constant 0 : index
      %37 = vector.load %arg6[%c0_21, %c0_22] : memref<32x64xf32, #tpu.memory_space<vmem>>, vector<32x64xf32>
      tpu.vector_store %arg6[%c0_21, %c0_22], %36 {strides = array<i32>} : memref<32x64xf32, #tpu.memory_space<vmem>>, vector<32x64xf32>,
      %cst_23 = arith.constant 0.000000e+00 : f32
      %38 = vector.broadcast %cst_23 : f32 to vector<8x64xf32>
      %c0_24 = arith.constant 0 : index
      %c0_25 = arith.constant 0 : index
      %39 = vector.load %arg5[%c0_24, %c0_25] : memref<8x64xf32, #tpu.memory_space<vmem>>, vector<8x64xf32>
      tpu.vector_store %arg5[%c0_24, %c0_25], %38 {strides = array<i32>} : memref<8x64xf32, #tpu.memory_space<vmem>>, vector<8x64xf32>,
    } else {
    }
    %c0 = arith.constant 0 : index
    %c0_1 = arith.constant 0 : index
    %c0_2 = arith.constant 0 : index
    %c0_3 = arith.constant 0 : index
    %3 = vector.load %arg2[%c0, %c0_1, %c0_2, %c0_3] : memref<1x4x8x288xbf16, #tpu.memory_space<vmem>>, vector<1x4x8x288xbf16>
    %4 = vector.shape_cast %3 : vector<1x4x8x288xbf16> to vector<4x8x288xbf16>
    %5 = vector.shape_cast %4 : vector<4x8x288xbf16> to vector<32x288xbf16>
    %c0_4 = arith.constant 0 : index
    %c0_5 = arith.constant 0 : index
    %6 = vector.load %arg3[%c0_4, %c0_5] : memref<288x64xbf16, #tpu.memory_space<vmem>>, vector<288x64xbf16>
    %cst = arith.constant dense<0.000000e+00> : vector<32x64xf32>
    %7 = tpu.matmul %5, %6, %cst {dimension_numbers = #tpu.dot_dimension_numbers<[1], [0], [0], [1], [0, 0, 1, 1], [], []>} : vector<32x288xbf16>, vector<288x64xbf16>, vector<32x64xf32> -> vector<32x64xf32>
    %c0_6 = arith.constant 0 : index
    %c0_7 = arith.constant 0 : index
    %8 = vector.load %arg4[%c0_6, %c0_7] : memref<1x64xf32, #tpu.memory_space<vmem>>, vector<1x64xf32>
    %9 = vector.broadcast %8 : vector<1x64xf32> to vector<32x64xf32>
    %10 = arith.addf %7, %9 : vector<32x64xf32>
    %c0_8 = arith.constant 0 : index
    %c0_9 = arith.constant 0 : index
    %11 = vector.load %arg6[%c0_8, %c0_9] : memref<32x64xf32, #tpu.memory_space<vmem>>, vector<32x64xf32>
    %12 = arith.subf %10, %11 : vector<32x64xf32>
    %cst_10 = arith.constant 5.000000e-01 : f32
    %13 = vector.broadcast %cst_10 : f32 to vector<32x64xf32>
    %14 = arith.mulf %12, %13 : vector<32x64xf32>
    %15 = arith.addf %11, %14 : vector<32x64xf32>
    %cst_11 = arith.constant 1.000000e+00 : f32
    %16 = vector.broadcast %cst_11 : f32 to vector<32x64xf32>
    %17 = arith.cmpf oge, %15, %16 : vector<32x64xf32>
    %cst_12 = arith.constant 0.000000e+00 : f32
    %18 = vector.broadcast %cst_12 : f32 to vector<32x64xf32>
    %19 = arith.select %17, %18, %15 : vector<32x64xi1>, vector<32x64xf32>
    %c0_13 = arith.constant 0 : index
    %c0_14 = arith.constant 0 : index
    %20 = vector.load %arg6[%c0_13, %c0_14] : memref<32x64xf32, #tpu.memory_space<vmem>>, vector<32x64xf32>
    tpu.vector_store %arg6[%c0_13, %c0_14], %19 {strides = array<i32>} : memref<32x64xf32, #tpu.memory_space<vmem>>, vector<32x64xf32>,
    %21 = vector.extract_strided_slice %17 {offsets = [0, 0], sizes = [8, 64], strides = [1, 1]} : vector<32x64xi1> to vector<8x64xi1>
    %22 = vector.extract_strided_slice %17 {offsets = [8, 0], sizes = [8, 64], strides = [1, 1]} : vector<32x64xi1> to vector<8x64xi1>
    %23 = arith.ori %21, %22 : vector<8x64xi1>
    %24 = vector.extract_strided_slice %17 {offsets = [16, 0], sizes = [8, 64], strides = [1, 1]} : vector<32x64xi1> to vector<8x64xi1>
    %25 = vector.extract_strided_slice %17 {offsets = [24, 0], sizes = [8, 64], strides = [1, 1]} : vector<32x64xi1> to vector<8x64xi1>
    %26 = arith.ori %24, %25 : vector<8x64xi1>
    %27 = arith.ori %23, %26 : vector<8x64xi1>
    %c0_15 = arith.constant 0 : index
    %c0_16 = arith.constant 0 : index
    %28 = vector.load %arg5[%c0_15, %c0_16] : memref<8x64xf32, #tpu.memory_space<vmem>>, vector<8x64xf32>
    %29 = arith.extui %27 : vector<8x64xi1> to vector<8x64xi32>
    %30 = arith.sitofp %29 : vector<8x64xi32> to vector<8x64xf32>
    %31 = arith.addf %28, %30 : vector<8x64xf32>
    %c0_17 = arith.constant 0 : index
    %c0_18 = arith.constant 0 : index
    %32 = vector.load %arg5[%c0_17, %c0_18] : memref<8x64xf32, #tpu.memory_space<vmem>>, vector<8x64xf32>
    tpu.vector_store %arg5[%c0_17, %c0_18], %31 {strides = array<i32>} : memref<8x64xf32, #tpu.memory_space<vmem>>, vector<8x64xf32>,
    %c7_i32 = arith.constant 7 : i32
    %33 = arith.cmpi eq, %arg1, %c7_i32 : i32
    %34 = arith.extui %33 : i1 to i32
    %c0_i32_19 = arith.constant 0 : i32
    %35 = arith.cmpi ne, %34, %c0_i32_19 : i32
    scf.if %35 {
      %c0_20 = arith.constant 0 : index
      %c0_21 = arith.constant 0 : index
      %36 = vector.load %arg5[%c0_20, %c0_21] : memref<8x64xf32, #tpu.memory_space<vmem>>, vector<8x64xf32>
      %cst_22 = arith.constant 1.250000e-01 : f32
      %37 = vector.broadcast %cst_22 : f32 to vector<8x64xf32>
      %38 = arith.mulf %36, %37 : vector<8x64xf32>
      %c0_23 = arith.constant 0 : index
      %c0_24 = arith.constant 0 : index
      %39 = vector.load %arg5[%c0_23, %c0_24] : memref<8x64xf32, #tpu.memory_space<vmem>>, vector<8x64xf32>
      tpu.vector_store %arg5[%c0_23, %c0_24], %38 {strides = array<i32>} : memref<8x64xf32, #tpu.memory_space<vmem>>, vector<8x64xf32>,
    } else {
    }
    return
  }
  func.func @transform_0(%arg0: i32, %arg1: i32) -> (i32, i32, i32, i32) {
    %c0_i32 = arith.constant 0 : i32
    %c0_i32_0 = arith.constant 0 : i32
    %c0_i32_1 = arith.constant 0 : i32
    return %arg1, %c0_i32, %arg0, %c0_i32_0 : i32, i32, i32, i32
  }
  func.func @transform_1(%arg0: i32, %arg1: i32) -> (i32, i32) {
    %c0_i32 = arith.constant 0 : i32
    %c0_i32_0 = arith.constant 0 : i32
    %c0_i32_1 = arith.constant 0 : i32
    return %c0_i32, %c0_i32_0 : i32, i32
  }
  func.func @transform_2(%arg0: i32, %arg1: i32) -> (i32, i32) {
    %c0_i32 = arith.constant 0 : i32
    %c0_i32_0 = arith.constant 0 : i32
    %c0_i32_1 = arith.constant 0 : i32
    return %c0_i32, %c0_i32_0 : i32, i32
  }
  func.func @transform_3(%arg0: i32, %arg1: i32) -> (i32, i32) {
    %c0_i32 = arith.constant 0 : i32
    %c0_i32_0 = arith.constant 0 : i32
    return %arg0, %c0_i32 : i32, i32
  }
}

</mosaic_0001>

<bundles_post_ra>
// kernel: cnn_forward.3
= control target key start
LH: loop header
LB: loop body
LE: loop exit
PB: predicated region body
PF: predicated region fallthrough
CT: control target
= control target key end

     0   :  { %s1515_s12 = smov 0   ;;  %s1517_s13 = smov 0   ;;  %s2056_s0 = inlined_call_operand.vmem [shape: bf16[4,128,27], index: 0, kind: input, shape index: {}]   ;;  %s2057_s1 = inlined_call_operand.vmem [shape: bf16[27,32], index: 1, kind: input, shape index: {}]   ;;  %s2058_s2 = inlined_call_operand.vmem [shape: f32[1,32], index: 2, kind: input, shape index: {}]   ;;  %s2059_s3 = inlined_call_operand.vmem [shape: bf16[8,128,32], index: 3, kind: output, shape index: {}]  }
   0x1   :  { %s1519_s14 = smov 0   ;;  %s1521_s15 = smov 0  }
   0x2   :  { %s1523_s16 = smov 0   ;;  %s1525_s17 = smov 0  }
   0x3   :  { %s1527_s18 = smov 0  }
   0x4 LB: > { %s22_s19 = sadd.s32 1, %s1482_s16  ;;  %s25_s20 = sadd.s32 1, %s1486_s17  ;;  %s1490_s18 = sphi %s1527_s18, %s13_s18   ;;  %s1486_s17 = sphi %s1525_s17, %s2129_s17   ;;  %s1482_s16 = sphi %s1523_s16, %s2128_s16   ;;  %s1478_s15 = sphi %s1521_s15, %s2127_s15   ;;  %s1474_s14 = sphi %s1519_s14, %s2126_s14   ;;  %s1470_s13 = sphi %s1517_s13, %s2125_s13   ;;  %s1466_s12 = sphi %s1515_s12, %s2124_s12  }
   0x5   : > { %p23_p0 = scmp.ge.s32.totalorder %s22_s19, 8  ;;  %p39_p1 = scmp.ne.s32.totalorder %s1470_s13, %s1466_s12 }
   0x6   : > { %p40_p2 = scmp.eq.s32.totalorder %s1490_s18, 0  ;;  %s32_s22 = sadd.s32 1, %s1470_s13 }
   0x7   : > { %s2131_s19 = smov (%p23_p0, %s22_s19), 0  ;;  %s2133_s20 = smov (!%p23_p0, %s25_s20), %s1486_s17 }
   0x8   : > { %p41_p3 = por %p40_p2, %p39_p1  ;;  %p27_p4 = scmp.ge.s32.totalorder %s2133_s20, 2 }
   0x9   : > { %p1229_p6 = scmp.ge.s32.totalorder %s1490_s18, 16 }
   0xa   : > { %s2135_s20 = smov (%p27_p4, %s2133_s20), 0 }
   0xb   : > { %s29_s21 = ssub.s32 %s1486_s17, %s2135_s20  ;;  %141 = sbr.rel (%p1229_p6) target bundleno = 30 (0x1e), region = 24 }
   0xc   : > { %p30_p5 = scmp.eq.s32.totalorder %s29_s21, 0 }
   0xe   : > { %s1564_s23 = scalar_select %p30_p5, %s1470_s13, %s32_s22  }
  0x12   : > { %144 = sbr.rel (!%p41_p3) target bundleno = 30 (0x1e), region = 28  ;;  %s146_s24 = sand.u32 (%p41_p3), 1, %s1470_s13  }
  0x13   : > { %s1292_s25 = sshll.u32 (%p41_p3), %s1486_s17, 5  ;;  %s1230_s26 = sshll.u32 (%p41_p3), %s146_s24, 7 }
  0x14   : > { %s1572_s29 = scalar_lea.vmem (%p41_p3), %s2056_s0, %s1292_s25  ;;  %s148_s30 = scalar_lea.vmem (%p41_p3), [#allocation4], %s1230_s26 }
  0x15   : > { %v167_v0 = vld [vmem:[%s1572_s29] sm:$0xff] (%p41_p3)   ;;  %v171_v1 = vld [vmem:[%s1572_s29 + $0x8] sm:$0xff] (%p41_p3)   ;;  %v175_v2 = vld [vmem:[%s1572_s29 + $0x10] sm:$0xff] (%p41_p3)  }
  0x16   : > { %168 = vst [vmem:[%s148_s30] sm:$0xff] (%p41_p3), %v167_v0   ;;  %172 = vst [vmem:[%s148_s30 + $0x8] sm:$0xff] (%p41_p3), %v171_v1   ;;  %v179_v3 = vld [vmem:[%s1572_s29 + $0x18] sm:$0xff] (%p41_p3)   ;;  %v183_v4 = vld [vmem:[%s1572_s29 + $0x40] sm:$0xff] (%p41_p3)  }
  0x17   : > { %176 = vst [vmem:[%s148_s30 + $0x10] sm:$0xff] (%p41_p3), %v175_v2   ;;  %v187_v5 = vld [vmem:[%s1572_s29 + $0x48] sm:$0xff] (%p41_p3)   ;;  %180 = vst [vmem:[%s148_s30 + $0x18] sm:$0xff] (%p41_p3), %v179_v3   ;;  %v191_v6 = vld [vmem:[%s1572_s29 + $0x50] sm:$0xff] (%p41_p3)  }
  0x18   : > { %184 = vst [vmem:[%s148_s30 + $0x20] sm:$0xff] (%p41_p3), %v183_v4   ;;  %188 = vst [vmem:[%s148_s30 + $0x28] sm:$0xff] (%p41_p3), %v187_v5   ;;  %v195_v7 = vld [vmem:[%s1572_s29 + $0x58] sm:$0xff] (%p41_p3)   ;;  %v199_v8 = vld [vmem:[%s1572_s29 + $0x80] sm:$0xff] (%p41_p3)  }
  0x19   : > { %192 = vst [vmem:[%s148_s30 + $0x30] sm:$0xff] %v191_v6   ;;  %196 = vst [vmem:[%s148_s30 + $0x38] sm:$0xff] %v195_v7   ;;  %v203_v9 = vld [vmem:[%s1572_s29 + $0x88] sm:$0xff]   ;;  %v207_v10 = vld [vmem:[%s1572_s29 + $0x90] sm:$0xff]  }
  0x1a   : > { %200 = vst [vmem:[%s148_s30 + $0x40] sm:$0xff] %v199_v8   ;;  %v211_v11 = vld [vmem:[%s1572_s29 + $0x98] sm:$0xff]   ;;  %204 = vst [vmem:[%s148_s30 + $0x48] sm:$0xff] %v203_v9   ;;  %v215_v12 = vld [vmem:[%s1572_s29 + $0xc0] sm:$0xff]  }
  0x1b   : > { %208 = vst [vmem:[%s148_s30 + $0x50] sm:$0xff] %v207_v10   ;;  %212 = vst [vmem:[%s148_s30 + $0x58] sm:$0xff] %v211_v11   ;;  %v219_v13 = vld [vmem:[%s1572_s29 + $0xc8] sm:$0xff]   ;;  %v223_v14 = vld [vmem:[%s1572_s29 + $0xd0] sm:$0xff]  }
  0x1c   : > { %216 = vst [vmem:[%s148_s30 + $0x60] sm:$0xff] %v215_v12   ;;  %220 = vst [vmem:[%s148_s30 + $0x68] sm:$0xff] %v219_v13   ;;  %v227_v15 = vld [vmem:[%s1572_s29 + $0xd8] sm:$0xff]  }
  0x1d   : > { %224 = vst [vmem:[%s148_s30 + $0x70] sm:$0xff] %v223_v14   ;;  %228 = vst [vmem:[%s148_s30 + $0x78] sm:$0xff] %v227_v15  }
  0x1e PF: > { %p1233_p7 = scmp.ge.s32.totalorder %s1490_s18, 1  ;;  %p316_p8 = scmp.lt.s32.totalorder %s1490_s18, 17 }
  0x20   : > { %p317_p9 = pnand %p1233_p7, %p316_p8 }
  0x21   : > { %s323_s4 = sand.u32 (!%p317_p9), 1, %s1466_s12   ;;  %s1235_s5 = sshll.u32 (!%p317_p9), %s1478_s15, 3 }
  0x22   : > { %320 = sbr.rel (%p317_p9) target bundleno = 371 (0x173), region = 69  ;;  %s1234_s6 = sshll.u32 (!%p317_p9), %s323_s4, 7 }
  0x23   : > { %p352_p10 = scmp.lt.s32.totalorder (!%p317_p9), %s1474_s14, 7  ;;  %p354_p11 = scmp.lt.s32.totalorder (!%p317_p9), %s1235_s5, 15 }
  0x24   : > { %s1601_s24 = scalar_lea.vmem (!%p317_p9), [#allocation4], %s1234_s6  ;;  %p1238_p12 = scmp.ne.s32.totalorder (!%p317_p9), %s1474_s14, 0 }
  0x29   : > { %s353_s7 = scalar_select %p352_p10, %s1474_s14, 7 }
  0x2a   : > { %s2137_s5 = smov (!%p354_p11, %s1235_s5), 15  ;;  %365 = sbr.rel (%p1238_p12) target bundleno = 297 (0x129), region = 77 }
  0x2b   : > { %s1236_s8 = sshll.u32 %s353_s7, 4  ;;  %v1418_v16 = vld [vmem:[%s2057_s1] sm:$0xff] (!%p1238_p12)   ;;  %vm582_vm0 = vcmask (!%p1238_p12), 1044480   ;;  %v1419_v17 = vld [vmem:[%s2057_s1 + $0x8] sm:$0x3f] (!%p1238_p12)   ;;  %vm583_vm1 = vcmask (!%p1238_p12), 1045504  }
  0x2c   : > { %s357_s9 = sadd.s32 %s1236_s8, %s2137_s5  ;;  %1319 = vmatprep.subr.bf16.mxu0 (!%p1238_p12), %v1418_v16  ;;  %1355 = vmatprep.subr.bf16.mxu1 (!%p1238_p12), %v1418_v16  ;;  %v1492_v18 = vmov (!%p1238_p12), 65535   ;;  %v1420_v20 = vld [vmem:[%s1601_s24] sm:$0xff] (!%p1238_p12)   ;;  %vm533_vm2 = vcmask (!%p1238_p12), 220160   ;;  %v1422_v24 = vld [vmem:[%s1601_s24 + $0x8] sm:$0xff] (!%p1238_p12)   ;;  %v1424_v26 = vld [vmem:[%s1601_s24 + $0x10] sm:$0xff] (!%p1238_p12)   ;;  %vm366_vm3 = vcmask (!%p1238_p12), 261120  }
  0x2d   : > { %s1237_s10 = sshll.u32 %s357_s9, 2  ;;  %1320 = vmatpush3.bf16.msra.mxu0 (!%p1238_p12), %v1418_v16  ;;  %1357 = vmatpush3.bf16.msra.mxu1 (!%p1238_p12), %v1418_v16  ;;  %v584_v19 = vsel (!%p1238_p12), %vm582_vm0, 4294967295, %v1492_v18  ;;  %v1421_v21 = vld [vmem:[%s1601_s24 + $0x40] sm:$0xff] (!%p1238_p12)   ;;  %v1423_v25 = vld [vmem:[%s1601_s24 + $0x48] sm:$0xff] (!%p1238_p12)   ;;  %v1425_v27 = vld [vmem:[%s1601_s24 + $0x50] sm:$0xff] (!%p1238_p12)   ;;  %v1493_v38 = vmov (!%p1238_p12), 0.0  }
  0x2e   : > { %s1599_s22 = scalar_lea.vmem %s2059_s3, %s1237_s10  ;;  %v585_v22 = vsel (!%p1238_p12), %vm583_vm1, %v584_v19, 0  ;;  %1323 = vmatprep.mubr.msk.bf16.mxu0 (!%p1238_p12), %vm533_vm2, %v1420_v20  ;;  %1339 = vmatprep.mubr.msk.bf16.mxu1 (!%p1238_p12), %vm533_vm2, %v1421_v21  ;;  %v1426_v28 = vld [vmem:[%s1601_s24 + $0x18] sm:$0xff] (!%p1238_p12)   ;;  %v1428_v30 = vld [vmem:[%s1601_s24 + $0x20] sm:$0xff] (!%p1238_p12)   ;;  %v1430_v32 = vld [vmem:[%s1601_s24 + $0x28] sm:$0xff] (!%p1238_p12)   ;;  %367 = vst.msk [vmem:[#allocation2] sm:$0xff] (!%p1238_p12), %vm366_vm3, %v1493_v38 }
  0x2f   : > { %v587_v23 = vand.u32 (!%p1238_p12), %v1419_v17, %v585_v22  ;;  %v1427_v29 = vld [vmem:[%s1601_s24 + $0x58] sm:$0xff] (!%p1238_p12)   ;;  %v1429_v31 = vld [vmem:[%s1601_s24 + $0x60] sm:$0xff] (!%p1238_p12)   ;;  %v1431_v33 = vld [vmem:[%s1601_s24 + $0x68] sm:$0xff] (!%p1238_p12)   ;;  %368 = vst.msk [vmem:[#allocation2 + $0x8] sm:$0xff] (!%p1238_p12), %vm366_vm3, %v1493_v38 }
  0x30   : > { %v1432_v34 = vld [vmem:[%s1601_s24 + $0x30] sm:$0xff] (!%p1238_p12)   ;;  %v1434_v36 = vld [vmem:[%s1601_s24 + $0x38] sm:$0xff] (!%p1238_p12)   ;;  %369 = vst.msk [vmem:[#allocation2 + $0x10] sm:$0xff] (!%p1238_p12), %vm366_vm3, %v1493_v38  ;;  %370 = vst.msk [vmem:[#allocation2 + $0x18] sm:$0xff] (!%p1238_p12), %vm366_vm3, %v1493_v38 }
  0x31   : > { %1321 = vmatprep.subr.bf16.mxu0 %v587_v23  ;;  %1356 = vmatprep.subr.bf16.mxu1 %v587_v23  ;;  %v1433_v35 = vld [vmem:[%s1601_s24 + $0x70] sm:$0xff]   ;;  %v1435_v37 = vld [vmem:[%s1601_s24 + $0x78] sm:$0xff]   ;;  %371 = vst.msk [vmem:[#allocation2 + $0x20] sm:$0xff] %vm366_vm3, %v1493_v38  ;;  %372 = vst.msk [vmem:[#allocation2 + $0x28] sm:$0xff] %vm366_vm3, %v1493_v38 }
  0x32   : > { %1322 = vmatpush3.bf16.msra.mxu0 %v587_v23  ;;  %1358 = vmatpush3.bf16.msra.mxu1 %v587_v23  ;;  %373 = vst.msk [vmem:[#allocation2 + $0x30] sm:$0xff] %vm366_vm3, %v1493_v38  ;;  %374 = vst.msk [vmem:[#allocation2 + $0x38] sm:$0xff] %vm366_vm3, %v1493_v38  ;;  %v1677_v40 = vld [vmem:[%s2058_s2] ss:$0 sm:$0xff] }
  0x33   : > { %375 = vst.msk [vmem:[#allocation2 + $0x40] sm:$0xff] %vm366_vm3, %v1493_v38  ;;  %376 = vst.msk [vmem:[#allocation2 + $0x48] sm:$0xff] %vm366_vm3, %v1493_v38 }
  0x34   : > { %377 = vst.msk [vmem:[#allocation2 + $0x50] sm:$0xff] %vm366_vm3, %v1493_v38  ;;  %378 = vst.msk [vmem:[#allocation2 + $0x58] sm:$0xff] %vm366_vm3, %v1493_v38 }
  0x35   : > { %1324 = vmatmul.mubr.msk.bf16.vlgmr.msra.gmra.mrb[0].mxu0 %vm533_vm2, %v1422_v24  ;;  %1340 = vmatmul.mubr.msk.bf16.vlgmr.msra.gmra.mrb[0].mxu1 %vm533_vm2, %v1423_v25  ;;  %379 = vst.msk [vmem:[#allocation2 + $0x60] sm:$0xff] %vm366_vm3, %v1493_v38  ;;  %380 = vst.msk [vmem:[#allocation2 + $0x68] sm:$0xff] %vm366_vm3, %v1493_v38 }
  0x36   : > { %1327 = vmatprep.mubr.msk.bf16.mxu0 %vm533_vm2, %v1424_v26  ;;  %1343 = vmatprep.mubr.msk.bf16.mxu1 %vm533_vm2, %v1425_v27  ;;  %381 = vst.msk [vmem:[#allocation2 + $0x70] sm:$0xff] %vm366_vm3, %v1493_v38  ;;  %382 = vst.msk [vmem:[#allocation2 + $0x78] sm:$0xff] %vm366_vm3, %v1493_v38 }
  0x37   : > { %383 = vst.msk [vmem:[#allocation2 + $0x80] sm:$0xff] %vm366_vm3, %v1493_v38  ;;  %384 = vst.msk [vmem:[#allocation2 + $0x88] sm:$0xff] %vm366_vm3, %v1493_v38 }
  0x38   : > { %385 = vst.msk [vmem:[#allocation2 + $0x90] sm:$0xff] %vm366_vm3, %v1493_v38  ;;  %386 = vst.msk [vmem:[#allocation2 + $0x98] sm:$0xff] %vm366_vm3, %v1493_v38 }
  0x39   : > { %387 = vst.msk [vmem:[#allocation2 + $0xa0] sm:$0xff] %vm366_vm3, %v1493_v38  ;;  %388 = vst.msk [vmem:[#allocation2 + $0xa8] sm:$0xff] %vm366_vm3, %v1493_v38 }
  0x3a   : > { %389 = vst.msk [vmem:[#allocation2 + $0xb0] sm:$0xff] %vm366_vm3, %v1493_v38  ;;  %390 = vst.msk [vmem:[#allocation2 + $0xb8] sm:$0xff] %vm366_vm3, %v1493_v38 }
  0x3b   : > { %391 = vst.msk [vmem:[#allocation2 + $0xc0] sm:$0xff] %vm366_vm3, %v1493_v38  ;;  %392 = vst.msk [vmem:[#allocation2 + $0xc8] sm:$0xff] %vm366_vm3, %v1493_v38 }
  0x3c   : > { %393 = vst.msk [vmem:[#allocation2 + $0xd0] sm:$0xff] %vm366_vm3, %v1493_v38  ;;  %394 = vst.msk [vmem:[#allocation2 + $0xd8] sm:$0xff] %vm366_vm3, %v1493_v38 }
  0x3d   : > { %1328 = vmatmul.mubr.msk.bf16.gmra.mrb[4].mxu0 %vm533_vm2, %v1426_v28  ;;  %1344 = vmatmul.mubr.msk.bf16.gmra.mrb[4].mxu1 %vm533_vm2, %v1427_v29  ;;  %395 = vst.msk [vmem:[#allocation2 + $0xe0] sm:$0xff] %vm366_vm3, %v1493_v38  ;;  %396 = vst.msk [vmem:[#allocation2 + $0xe8] sm:$0xff] %vm366_vm3, %v1493_v38 }
  0x3e   : > { %1331 = vmatprep.mubr.msk.bf16.mxu0 %vm533_vm2, %v1428_v30  ;;  %1347 = vmatprep.mubr.msk.bf16.mxu1 %vm533_vm2, %v1429_v31  ;;  %397 = vst.msk [vmem:[#allocation2 + $0xf0] sm:$0xff] %vm366_vm3, %v1493_v38  ;;  %398 = vst.msk [vmem:[#allocation2 + $0xf8] sm:$0xff] %vm366_vm3, %v1493_v38 }
  0x45   : > { %1332 = vmatmul.mubr.msk.bf16.gmra.mrb[8].mxu0 %vm533_vm2, %v1430_v32  ;;  %1348 = vmatmul.mubr.msk.bf16.gmra.mrb[8].mxu1 %vm533_vm2, %v1431_v33 }
  0x46   : > { %1335 = vmatprep.mubr.msk.bf16.mxu0 %vm533_vm2, %v1432_v34  ;;  %1351 = vmatprep.mubr.msk.bf16.mxu1 %vm533_vm2, %v1433_v35 }
  0x4d   : > { %1336 = vmatmul.mubr.msk.bf16.gmra.mrb[12].mxu0 %vm533_vm2, %v1434_v36  ;;  %1352 = vmatmul.mubr.msk.bf16.gmra.mrb[12].mxu1 %vm533_vm2, %v1435_v37 }
 0x108   : > { %v1325_v39 = vpop.f32.mrb[0].mxu0  ;;  %v1341_v41 = vpop.f32.mrb[0].mxu1 }
 0x109   : > { %v623_v42 = vpop.f32.mrb[1].mxu0  ;;  %v687_v43 = vpop.f32.mrb[1].mxu1  ;;  %v632_v46 = vadd.f32 %v1325_v39, %v1677_v40  ;;  %v696_v47 = vadd.f32 %v1341_v41, %v1677_v40 }
 0x10a   : > { %v1326_v44 = vpop.f32.mrb[2].mxu0  ;;  %v1342_v45 = vpop.f32.mrb[2].mxu1  ;;  %v624_v52 = vadd.f32 %v1677_v40, %v623_v42  ;;  %v688_v53 = vadd.f32 %v1677_v40, %v687_v43 }
 0x10b   : > { %v635_v48 = vadd.f32 %v1326_v44, %v1677_v40  ;;  %v699_v49 = vadd.f32 %v1342_v45, %v1677_v40  ;;  %v626_v50 = vpop.f32.mrb[3].mxu0  ;;  %v690_v51 = vpop.f32.mrb[3].mxu1 }
 0x10c   : > { %v627_v54 = vadd.f32 %v1677_v40, %v626_v50  ;;  %v691_v55 = vadd.f32 %v1677_v40, %v690_v51 }
 0x10d   : > { %v751_v56 = vpack.c.bf16 %v635_v48, %v632_v46  ;;  %v759_v57 = vpack.c.bf16 %v699_v49, %v696_v47 }
 0x10e   : > { %v750_v58 = vpack.c.bf16 %v627_v54, %v624_v52  ;;  %v758_v59 = vpack.c.bf16 %v691_v55, %v688_v53 }
 0x10f   : > { %767 = vst.msk [vmem:[#allocation3 + $0x8] sm:$0xff] %vm366_vm3, %v751_v56  ;;  %775 = vst.msk [vmem:[#allocation3 + $0x48] sm:$0xff] %vm366_vm3, %v759_v57 }
 0x110   : > { %766 = vst.msk [vmem:[#allocation3] sm:$0xff] %vm366_vm3, %v750_v58  ;;  %774 = vst.msk [vmem:[#allocation3 + $0x40] sm:$0xff] %vm366_vm3, %v758_v59  ;;  %v1329_v60 = vpop.f32.mrb[4].mxu0  ;;  %v1345_v61 = vpop.f32.mrb[4].mxu1 }
 0x111   : > { %v639_v62 = vpop.f32.mrb[5].mxu0  ;;  %v703_v63 = vpop.f32.mrb[5].mxu1  ;;  %v648_v2 = vadd.f32 %v1329_v60, %v1677_v40  ;;  %v712_v3 = vadd.f32 %v1345_v61, %v1677_v40 }
 0x112   : > { %v1330_v0 = vpop.f32.mrb[6].mxu0  ;;  %v1346_v1 = vpop.f32.mrb[6].mxu1  ;;  %v640_v8 = vadd.f32 %v1677_v40, %v639_v62  ;;  %v704_v9 = vadd.f32 %v1677_v40, %v703_v63 }
 0x113   : > { %v651_v4 = vadd.f32 %v1330_v0, %v1677_v40  ;;  %v715_v5 = vadd.f32 %v1346_v1, %v1677_v40  ;;  %v642_v6 = vpop.f32.mrb[7].mxu0  ;;  %v706_v7 = vpop.f32.mrb[7].mxu1 }
 0x114   : > { %v643_v10 = vadd.f32 %v1677_v40, %v642_v6  ;;  %v707_v11 = vadd.f32 %v1677_v40, %v706_v7 }
 0x115   : > { %v753_v12 = vpack.c.bf16 %v651_v4, %v648_v2  ;;  %v761_v13 = vpack.c.bf16 %v715_v5, %v712_v3 }
 0x116   : > { %v752_v14 = vpack.c.bf16 %v643_v10, %v640_v8  ;;  %v760_v15 = vpack.c.bf16 %v707_v11, %v704_v9 }
 0x117   : > { %769 = vst.msk [vmem:[#allocation3 + $0x18] sm:$0xff] %vm366_vm3, %v753_v12  ;;  %777 = vst.msk [vmem:[#allocation3 + $0x58] sm:$0xff] %vm366_vm3, %v761_v13 }
 0x118   : > { %768 = vst.msk [vmem:[#allocation3 + $0x10] sm:$0xff] %vm366_vm3, %v752_v14  ;;  %776 = vst.msk [vmem:[#allocation3 + $0x50] sm:$0xff] %vm366_vm3, %v760_v15  ;;  %v1333_v16 = vpop.f32.mrb[8].mxu0  ;;  %v1349_v17 = vpop.f32.mrb[8].mxu1 }
 0x119   : > { %v655_v18 = vpop.f32.mrb[9].mxu0  ;;  %v719_v19 = vpop.f32.mrb[9].mxu1  ;;  %v664_v22 = vadd.f32 %v1333_v16, %v1677_v40  ;;  %v728_v23 = vadd.f32 %v1349_v17, %v1677_v40 }
 0x11a   : > { %v1334_v20 = vpop.f32.mrb[10].mxu0  ;;  %v1350_v21 = vpop.f32.mrb[10].mxu1  ;;  %v656_v28 = vadd.f32 %v1677_v40, %v655_v18  ;;  %v720_v29 = vadd.f32 %v1677_v40, %v719_v19 }
 0x11b   : > { %v667_v24 = vadd.f32 %v1334_v20, %v1677_v40  ;;  %v731_v25 = vadd.f32 %v1350_v21, %v1677_v40  ;;  %v658_v26 = vpop.f32.mrb[11].mxu0  ;;  %v722_v27 = vpop.f32.mrb[11].mxu1 }
 0x11c   : > { %v659_v30 = vadd.f32 %v1677_v40, %v658_v26  ;;  %v723_v31 = vadd.f32 %v1677_v40, %v722_v27 }
 0x11d   : > { %v755_v32 = vpack.c.bf16 %v667_v24, %v664_v22  ;;  %v763_v33 = vpack.c.bf16 %v731_v25, %v728_v23 }
 0x11e   : > { %v754_v34 = vpack.c.bf16 %v659_v30, %v656_v28  ;;  %v762_v35 = vpack.c.bf16 %v723_v31, %v720_v29 }
 0x11f   : > { %771 = vst.msk [vmem:[#allocation3 + $0x28] sm:$0xff] %vm366_vm3, %v755_v32  ;;  %779 = vst.msk [vmem:[#allocation3 + $0x68] sm:$0xff] %vm366_vm3, %v763_v33 }
 0x120   : > { %770 = vst.msk [vmem:[#allocation3 + $0x20] sm:$0xff] %vm366_vm3, %v754_v34  ;;  %778 = vst.msk [vmem:[#allocation3 + $0x60] sm:$0xff] %vm366_vm3, %v762_v35  ;;  %v1337_v36 = vpop.f32.mrb[12].mxu0  ;;  %v1353_v37 = vpop.f32.mrb[12].mxu1 }
 0x121   : > { %v671_v38 = vpop.f32.mrb[13].mxu0  ;;  %v735_v39 = vpop.f32.mrb[13].mxu1  ;;  %v680_v43 = vadd.f32 %v1337_v36, %v1677_v40  ;;  %v744_v44 = vadd.f32 %v1353_v37, %v1677_v40 }
 0x122   : > { %v1338_v41 = vpop.f32.mrb[14].mxu0  ;;  %v1354_v42 = vpop.f32.mrb[14].mxu1  ;;  %v672_v49 = vadd.f32 %v1677_v40, %v671_v38  ;;  %v736_v50 = vadd.f32 %v1677_v40, %v735_v39 }
 0x123   : > { %v683_v45 = vadd.f32 %v1338_v41, %v1677_v40  ;;  %v747_v46 = vadd.f32 %v1354_v42, %v1677_v40  ;;  %v674_v47 = vpop.f32.mrb[15].mxu0  ;;  %v738_v48 = vpop.f32.mrb[15].mxu1 }
 0x124   : > { %v675_v51 = vadd.f32 %v1677_v40, %v674_v47  ;;  %v739_v52 = vadd.f32 %v1677_v40, %v738_v48 }
 0x125   : > { %v757_v53 = vpack.c.bf16 %v683_v45, %v680_v43  ;;  %v765_v54 = vpack.c.bf16 %v747_v46, %v744_v44 }
 0x126   : > { %v756_v55 = vpack.c.bf16 %v675_v51, %v672_v49  ;;  %v764_v56 = vpack.c.bf16 %v739_v52, %v736_v50 }
 0x127   : > { %773 = vst.msk [vmem:[#allocation3 + $0x38] sm:$0xff] %vm366_vm3, %v757_v53  ;;  %781 = vst.msk [vmem:[#allocation3 + $0x78] sm:$0xff] %vm366_vm3, %v765_v54 }
 0x128   : > { %772 = vst.msk [vmem:[#allocation3 + $0x30] sm:$0xff] %vm366_vm3, %v756_v55  ;;  %780 = vst.msk [vmem:[#allocation3 + $0x70] sm:$0xff] %vm366_vm3, %v764_v56 }
 0x129 PF: > { %v782_v57 = vld [vmem:[#allocation3] sm:$0xff]  ;;  %v783_v62 = vld [vmem:[#allocation3 + $0x8] sm:$0xff]  ;;  %vm2073_vm4 = vcmask 261120   ;;  %v784_v2 = vld [vmem:[#allocation3 + $0x10] sm:$0xff] }
 0x12a   : > { %v798_v60 = vunpack.c.l.bf16 %v782_v57  ;;  %v799_v61 = vunpack.c.h.bf16 %v782_v57  ;;  %v800_v0 = vunpack.c.l.bf16 %v783_v62  ;;  %v801_v1 = vunpack.c.h.bf16 %v783_v62  ;;  %v785_v9 = vld [vmem:[#allocation3 + $0x18] sm:$0xff]  ;;  %v836_v10 = vld [vmem:[#allocation2 + $0x30] sm:$0xff]  ;;  %v786_v36 = vld [vmem:[#allocation3 + $0x20] sm:$0xff] }
 0x12b   : > { %v802_v7 = vunpack.c.l.bf16 %v784_v2  ;;  %v803_v8 = vunpack.c.h.bf16 %v784_v2  ;;  %v837_v11 = vld [vmem:[#allocation2 + $0x38] sm:$0xff]  ;;  %v804_v14 = vunpack.c.l.bf16 %v785_v9  ;;  %v805_v15 = vunpack.c.h.bf16 %v785_v9  ;;  %v787_v37 = vld [vmem:[#allocation3 + $0x28] sm:$0xff]  ;;  %v838_v46 = vld [vmem:[#allocation2 + $0x40] sm:$0xff] }
 0x12c   : > { %v839_v47 = vld [vmem:[#allocation2 + $0x48] sm:$0xff]  ;;  %v840_v48 = vld [vmem:[#allocation2 + $0x50] sm:$0xff]  ;;  %v806_v49 = vunpack.c.l.bf16 %v786_v36  ;;  %v807_v50 = vunpack.c.h.bf16 %v786_v36  ;;  %v808_v51 = vunpack.c.l.bf16 %v787_v37  ;;  %v809_v52 = vunpack.c.h.bf16 %v787_v37  ;;  %v841_v53 = vld [vmem:[#allocation2 + $0x58] sm:$0xff] }
 0x12d   : > { %v830_v58 = vld [vmem:[#allocation2] sm:$0xff]  ;;  %v868_v22 = vsub.f32 %v804_v14, %v836_v10  ;;  %v869_v23 = vsub.f32 %v805_v15, %v837_v11  ;;  %v843_v55 = vld [vmem:[#allocation2 + $0x68] sm:$0xff]  ;;  %v844_v2 = vld [vmem:[#allocation2 + $0x70] sm:$0xff] }
 0x12e   : > { %v831_v59 = vld [vmem:[#allocation2 + $0x8] sm:$0xff]  ;;  %v862_v5 = vsub.f32 %v798_v60, %v830_v58  ;;  %v842_v54 = vld [vmem:[#allocation2 + $0x60] sm:$0xff]  ;;  %v871_v62 = vsub.f32 %v807_v50, %v839_v47 }
 0x12f   : > { %v832_v40 = vld [vmem:[#allocation2 + $0x10] sm:$0xff]  ;;  %v833_v63 = vld [vmem:[#allocation2 + $0x18] sm:$0xff]  ;;  %v863_v6 = vsub.f32 %v799_v61, %v831_v59  ;;  %v900_v30 = vmul.f32 0.5, %v868_v22  ;;  %v901_v31 = vmul.f32 0.5, %v869_v23  ;;  %v870_v61 = vsub.f32 %v806_v49, %v838_v46  ;;  %v850_v50 = vld [vmem:[#allocation2 + $0xa0] sm:$0xff] }
 0x130   : > { %v834_v3 = vld [vmem:[#allocation2 + $0x20] sm:$0xff]  ;;  %v835_v4 = vld [vmem:[#allocation2 + $0x28] sm:$0xff]  ;;  %v864_v12 = vsub.f32 %v800_v0, %v832_v40  ;;  %v865_v13 = vsub.f32 %v801_v1, %v833_v63  ;;  %v894_v16 = vmul.f32 0.5, %v862_v5  ;;  %v788_v41 = vld [vmem:[#allocation3 + $0x30] sm:$0xff]  ;;  %v903_v5 = vmul.f32 0.5, %v871_v62 }
 0x131   : > { %v895_v17 = vmul.f32 0.5, %v863_v6  ;;  %v866_v18 = vsub.f32 %v802_v7, %v834_v3  ;;  %v867_v19 = vsub.f32 %v803_v8, %v835_v4  ;;  %v1767_v44 = vadd.f32 %v900_v30, %v836_v10  ;;  %v849_v49 = vld [vmem:[#allocation2 + $0x98] sm:$0xff] }
 0x132   : > { %v896_v20 = vmul.f32 0.5, %v864_v12  ;;  %v897_v21 = vmul.f32 0.5, %v865_v13  ;;  %v1727_v24 = vadd.f32 %v894_v16, %v830_v58  ;;  %v1769_v45 = vadd.f32 %v901_v31, %v837_v11  ;;  %v789_v58 = vld [vmem:[#allocation3 + $0x38] sm:$0xff] }
 0x133   : > { %v1729_v25 = vadd.f32 %v895_v17, %v831_v59  ;;  %v898_v26 = vmul.f32 0.5, %v866_v18  ;;  %v899_v27 = vmul.f32 0.5, %v867_v19  ;;  %vm2062_vm11 = vcmp.ge.f32.partialorder %v1767_v44, 1.0 }
 0x134   : > { %v1731_v28 = vadd.f32 %v896_v20, %v832_v40  ;;  %v1733_v29 = vadd.f32 %v897_v21, %v833_v63  ;;  %vm958_vm5 = vcmp.ge.f32.partialorder %v1727_v24, 1.0  ;;  %vm2060_vm12 = vcmp.ge.f32.partialorder %v1769_v45, 1.0 }
 0x135   : > { %vm959_vm6 = vcmp.ge.f32.partialorder %v1729_v25, 1.0  ;;  %v1737_v32 = vadd.f32 %v898_v26, %v834_v3  ;;  %v1739_v33 = vadd.f32 %v899_v27, %v835_v4  ;;  %v990_v34 = vsel %vm958_vm5, 0.0, %v1727_v24  ;;  %v845_v3 = vld [vmem:[#allocation2 + $0x78] sm:$0xff]  ;;  %v790_v26 = vld [vmem:[#allocation3 + $0x40] sm:$0xff]  ;;  %v791_v27 = vld [vmem:[#allocation3 + $0x48] sm:$0xff] }
 0x136   : > { %v991_v35 = vsel %vm959_vm6, 0.0, %v1729_v25  ;;  %vm960_vm7 = vcmp.ge.f32.partialorder %v1731_v28, 1.0  ;;  %vm961_vm8 = vcmp.ge.f32.partialorder %v1733_v29, 1.0  ;;  %1023 = vst.msk [vmem:[#allocation2] sm:$0xff] %vm2073_vm4, %v990_v34  ;;  %v810_v56 = vunpack.c.l.bf16 %v788_v41  ;;  %v792_v34 = vld [vmem:[#allocation3 + $0x50] sm:$0xff] }
 0x137   : > { %1024 = vst.msk [vmem:[#allocation2 + $0x8] sm:$0xff] %vm2073_vm4, %v991_v35  ;;  %v992_v38 = vsel %vm960_vm7, 0.0, %v1731_v28  ;;  %v993_v39 = vsel %vm961_vm8, 0.0, %v1733_v29  ;;  %vm962_vm9 = vcmp.ge.f32.partialorder %v1737_v32, 1.0  ;;  %vm2064_vm10 = vcmp.ge.f32.partialorder %v1739_v33, 1.0 }
 0x138   : > { %1025 = vst.msk [vmem:[#allocation2 + $0x10] sm:$0xff] %vm2073_vm4, %v992_v38  ;;  %1026 = vst.msk [vmem:[#allocation2 + $0x18] sm:$0xff] %vm2073_vm4, %v993_v39  ;;  %v994_v42 = vsel %vm962_vm9, 0.0, %v1737_v32  ;;  %v995_v43 = vsel %vm2064_vm10, 0.0, %v1739_v33  ;;  %v811_v57 = vunpack.c.h.bf16 %v788_v41  ;;  %v996_v59 = vsel %vm2062_vm11, 0.0, %v1767_v44  ;;  %v846_v39 = vld [vmem:[#allocation2 + $0x80] sm:$0xff] }
 0x139   : > { %1027 = vst.msk [vmem:[#allocation2 + $0x20] sm:$0xff] %vm2073_vm4, %v994_v42  ;;  %1028 = vst.msk [vmem:[#allocation2 + $0x28] sm:$0xff] %vm2073_vm4, %v995_v43  ;;  %v997_v60 = vsel %vm2060_vm12, 0.0, %v1769_v45  ;;  %v872_v40 = vsub.f32 %v808_v51, %v840_v48  ;;  %v873_v63 = vsub.f32 %v809_v52, %v841_v53  ;;  %v874_v0 = vsub.f32 %v810_v56, %v842_v54  ;;  %v847_v41 = vld [vmem:[#allocation2 + $0x88] sm:$0xff]  ;;  %v848_v42 = vld [vmem:[#allocation2 + $0x90] sm:$0xff] }
 0x13a   : > { %1029 = vst.msk [vmem:[#allocation2 + $0x30] sm:$0xff] %vm2073_vm4, %v996_v59  ;;  %1030 = vst.msk [vmem:[#allocation2 + $0x38] sm:$0xff] %vm2073_vm4, %v997_v60  ;;  %v875_v1 = vsub.f32 %v811_v57, %v843_v55  ;;  %v902_v4 = vmul.f32 0.5, %v870_v61  ;;  %v812_v6 = vunpack.c.l.bf16 %v789_v58  ;;  %v813_v7 = vunpack.c.h.bf16 %v789_v58  ;;  %v851_v51 = vld [vmem:[#allocation2 + $0xa8] sm:$0xff] }
 0x13b   : > { %v904_v8 = vmul.f32 0.5, %v872_v40  ;;  %v905_v9 = vmul.f32 0.5, %v873_v63  ;;  %v906_v10 = vmul.f32 0.5, %v874_v0  ;;  %v1785_v13 = vadd.f32 %v903_v5, %v839_v47  ;;  %v852_v40 = vld [vmem:[#allocation2 + $0xb0] sm:$0xff]  ;;  %v853_v63 = vld [vmem:[#allocation2 + $0xb8] sm:$0xff] }
 0x13c   : > { %v907_v11 = vmul.f32 0.5, %v875_v1  ;;  %v1783_v12 = vadd.f32 %v902_v4, %v838_v46  ;;  %v876_v14 = vsub.f32 %v812_v6, %v844_v2  ;;  %v877_v15 = vsub.f32 %v813_v7, %v845_v3 }
 0x13d   : > { %v1787_v16 = vadd.f32 %v904_v8, %v840_v48  ;;  %v1789_v17 = vadd.f32 %v905_v9, %v841_v53  ;;  %v1791_v18 = vadd.f32 %v906_v10, %v842_v54  ;;  %vm967_vm14 = vcmp.ge.f32.partialorder %v1785_v13, 1.0  ;;  %v793_v54 = vld [vmem:[#allocation3 + $0x58] sm:$0xff] }
 0x13e   : > { %v1793_v19 = vadd.f32 %v907_v11, %v843_v55  ;;  %vm966_vm13 = vcmp.ge.f32.partialorder %v1783_v12, 1.0  ;;  %v908_v20 = vmul.f32 0.5, %v876_v14  ;;  %v909_v21 = vmul.f32 0.5, %v877_v15 }
 0x13f   : > { %v998_v22 = vsel %vm966_vm13, 0.0, %v1783_v12  ;;  %v999_v23 = vsel %vm967_vm14, 0.0, %v1785_v13  ;;  %vm968_vm15 = vcmp.ge.f32.partialorder %v1787_v16, 1.0  ;;  %vm969_vm0 = vcmp.ge.f32.partialorder %v1789_v17, 1.0 }
 0x140   : > { %1031 = vst.msk [vmem:[#allocation2 + $0x40] sm:$0xff] %vm2073_vm4, %v998_v22  ;;  %1032 = vst.msk [vmem:[#allocation2 + $0x48] sm:$0xff] %vm2073_vm4, %v999_v23  ;;  %v1000_v30 = vsel %vm968_vm15, 0.0, %v1787_v16  ;;  %v1001_v31 = vsel %vm969_vm0, 0.0, %v1789_v17  ;;  %vm970_vm1 = vcmp.ge.f32.partialorder %v1791_v18, 1.0  ;;  %vm2066_vm2 = vcmp.ge.f32.partialorder %v1793_v19, 1.0 }
 0x141   : > { %1033 = vst.msk [vmem:[#allocation2 + $0x50] sm:$0xff] %vm2073_vm4, %v1000_v30  ;;  %1034 = vst.msk [vmem:[#allocation2 + $0x58] sm:$0xff] %vm2073_vm4, %v1001_v31  ;;  %v1002_v35 = vsel %vm970_vm1, 0.0, %v1791_v18  ;;  %v1003_v36 = vsel %vm2066_vm2, 0.0, %v1793_v19  ;;  %v1823_v37 = vadd.f32 %v908_v20, %v844_v2  ;;  %v1825_v38 = vadd.f32 %v909_v21, %v845_v3  ;;  %v794_v30 = vld [vmem:[#allocation3 + $0x60] sm:$0xff]  ;;  %v795_v31 = vld [vmem:[#allocation3 + $0x68] sm:$0xff] }
 0x142   : > { %1035 = vst.msk [vmem:[#allocation2 + $0x60] sm:$0xff] %vm2073_vm4, %v1002_v35  ;;  %1036 = vst.msk [vmem:[#allocation2 + $0x68] sm:$0xff] %vm2073_vm4, %v1003_v36  ;;  %v814_v43 = vunpack.c.l.bf16 %v790_v26  ;;  %v815_v46 = vunpack.c.h.bf16 %v790_v26  ;;  %v816_v47 = vunpack.c.l.bf16 %v791_v27  ;;  %v817_v48 = vunpack.c.h.bf16 %v791_v27  ;;  %v796_v36 = vld [vmem:[#allocation3 + $0x70] sm:$0xff] }
 0x143   : > { %vm2063_vm3 = vcmp.ge.f32.partialorder %v1823_v37, 1.0  ;;  %vm2061_vm12 = vcmp.ge.f32.partialorder %v1825_v38, 1.0  ;;  %v818_v52 = vunpack.c.l.bf16 %v792_v34  ;;  %v819_v53 = vunpack.c.h.bf16 %v792_v34 }
 0x144   : > { %v1004_v55 = vsel %vm2063_vm3, 0.0, %v1823_v37  ;;  %v1005_v56 = vsel %vm2061_vm12, 0.0, %v1825_v38  ;;  %v878_v57 = vsub.f32 %v814_v43, %v846_v39  ;;  %v879_v58 = vsub.f32 %v815_v46, %v847_v41  ;;  %v854_v46 = vld [vmem:[#allocation2 + $0xc0] sm:$0xff] }
 0x145   : > { %1037 = vst.msk [vmem:[#allocation2 + $0x70] sm:$0xff] %vm2073_vm4, %v1004_v55  ;;  %1038 = vst.msk [vmem:[#allocation2 + $0x78] sm:$0xff] %vm2073_vm4, %v1005_v56  ;;  %v880_v59 = vsub.f32 %v816_v47, %v848_v42  ;;  %v881_v60 = vsub.f32 %v817_v48, %v849_v49  ;;  %v882_v61 = vsub.f32 %v818_v52, %v850_v50  ;;  %v820_v2 = vunpack.c.l.bf16 %v793_v54  ;;  %v855_v47 = vld [vmem:[#allocation2 + $0xc8] sm:$0xff]  ;;  %v856_v48 = vld [vmem:[#allocation2 + $0xd0] sm:$0xff] }
 0x146   : > { %v883_v62 = vsub.f32 %v819_v53, %v851_v51  ;;  %v910_v0 = vmul.f32 0.5, %v878_v57  ;;  %v911_v1 = vmul.f32 0.5, %v879_v58  ;;  %v821_v3 = vunpack.c.h.bf16 %v793_v54  ;;  %v857_v53 = vld [vmem:[#allocation2 + $0xd8] sm:$0xff]  ;;  %v858_v54 = vld [vmem:[#allocation2 + $0xe0] sm:$0xff]  ;;  %v859_v55 = vld [vmem:[#allocation2 + $0xe8] sm:$0xff] }
 0x147   : > { %v912_v4 = vmul.f32 0.5, %v880_v59  ;;  %v913_v5 = vmul.f32 0.5, %v881_v60  ;;  %v914_v6 = vmul.f32 0.5, %v882_v61  ;;  %v884_v10 = vsub.f32 %v820_v2, %v852_v40  ;;  %v797_v58 = vld [vmem:[#allocation3 + $0x78] sm:$0xff]  ;;  %v860_v2 = vld [vmem:[#allocation2 + $0xf0] sm:$0xff] }
 0x148   : > { %v915_v7 = vmul.f32 0.5, %v883_v62  ;;  %v1839_v8 = vadd.f32 %v910_v0, %v846_v39  ;;  %v1841_v9 = vadd.f32 %v911_v1, %v847_v41  ;;  %v885_v11 = vsub.f32 %v821_v3, %v853_v63  ;;  %v861_v3 = vld [vmem:[#allocation2 + $0xf8] sm:$0xff] }
 0x149   : > { %v1843_v14 = vadd.f32 %v912_v4, %v848_v42  ;;  %v1845_v15 = vadd.f32 %v913_v5, %v849_v49  ;;  %v1847_v20 = vadd.f32 %v914_v6, %v850_v50  ;;  %v916_v22 = vmul.f32 0.5, %v884_v10 }
 0x14a   : > { %v1849_v21 = vadd.f32 %v915_v7, %v851_v51  ;;  %vm974_vm12 = vcmp.ge.f32.partialorder %v1839_v8, 1.0  ;;  %vm2065_vm11 = vcmp.ge.f32.partialorder %v1841_v9, 1.0  ;;  %v917_v23 = vmul.f32 0.5, %v885_v11 }
 0x14b   : > { %v1006_v26 = vsel %vm974_vm12, 0.0, %v1839_v8  ;;  %v1007_v27 = vsel %vm2065_vm11, 0.0, %v1841_v9  ;;  %vm2072_vm3 = vcmp.ge.f32.partialorder %v1843_v14, 1.0  ;;  %vm2071_vm10 = vcmp.ge.f32.partialorder %v1845_v15, 1.0 }
 0x14c   : > { %1039 = vst.msk [vmem:[#allocation2 + $0x80] sm:$0xff] %vm2073_vm4, %v1006_v26  ;;  %1040 = vst.msk [vmem:[#allocation2 + $0x88] sm:$0xff] %vm2073_vm4, %v1007_v27  ;;  %v1008_v34 = vsel %vm2072_vm3, 0.0, %v1843_v14  ;;  %v1009_v35 = vsel %vm2071_vm10, 0.0, %v1845_v15  ;;  %vm2068_vm11 = vcmp.ge.f32.partialorder %v1847_v20, 1.0  ;;  %vm2067_vm2 = vcmp.ge.f32.partialorder %v1849_v21, 1.0 }
 0x14d   : > { %1041 = vst.msk [vmem:[#allocation2 + $0x90] sm:$0xff] %vm2073_vm4, %v1008_v34  ;;  %1042 = vst.msk [vmem:[#allocation2 + $0x98] sm:$0xff] %vm2073_vm4, %v1009_v35  ;;  %v1010_v39 = vsel %vm2068_vm11, 0.0, %v1847_v20  ;;  %v1011_v41 = vsel %vm2067_vm2, 0.0, %v1849_v21  ;;  %v1879_v42 = vadd.f32 %v916_v22, %v852_v40  ;;  %v1881_v43 = vadd.f32 %v917_v23, %v853_v63 }
 0x14e   : > { %1043 = vst.msk [vmem:[#allocation2 + $0xa0] sm:$0xff] %vm2073_vm4, %v1010_v39  ;;  %1044 = vst.msk [vmem:[#allocation2 + $0xa8] sm:$0xff] %vm2073_vm4, %v1011_v41  ;;  %v822_v49 = vunpack.c.l.bf16 %v794_v30  ;;  %v823_v50 = vunpack.c.h.bf16 %v794_v30  ;;  %v824_v51 = vunpack.c.l.bf16 %v795_v31  ;;  %v825_v52 = vunpack.c.h.bf16 %v795_v31 }
 0x14f   : > { %vm2070_vm2 = vcmp.ge.f32.partialorder %v1879_v42, 1.0  ;;  %vm2069_vm11 = vcmp.ge.f32.partialorder %v1881_v43, 1.0  ;;  %v826_v56 = vunpack.c.l.bf16 %v796_v36  ;;  %v827_v57 = vunpack.c.h.bf16 %v796_v36 }
 0x150   : > { %v1012_v59 = vsel %vm2070_vm2, 0.0, %v1879_v42  ;;  %v1013_v60 = vsel %vm2069_vm11, 0.0, %v1881_v43  ;;  %v886_v61 = vsub.f32 %v822_v49, %v854_v46  ;;  %v887_v62 = vsub.f32 %v823_v50, %v855_v47  ;;  %vm1899_vm11 = vmor %vm958_vm5, %vm966_vm13 }
 0x151   : > { %1045 = vst.msk [vmem:[#allocation2 + $0xb0] sm:$0xff] %vm2073_vm4, %v1012_v59  ;;  %1046 = vst.msk [vmem:[#allocation2 + $0xb8] sm:$0xff] %vm2073_vm4, %v1013_v60  ;;  %v888_v40 = vsub.f32 %v824_v51, %v856_v48  ;;  %v889_v63 = vsub.f32 %v825_v52, %v857_v53  ;;  %v890_v0 = vsub.f32 %v826_v56, %v858_v54  ;;  %v828_v6 = vunpack.c.l.bf16 %v797_v58 }
 0x152   : > { %v891_v1 = vsub.f32 %v827_v57, %v859_v55  ;;  %v918_v4 = vmul.f32 0.5, %v886_v61  ;;  %v919_v5 = vmul.f32 0.5, %v887_v62  ;;  %v829_v7 = vunpack.c.h.bf16 %v797_v58  ;;  %vm1907_vm2 = vmor %vm959_vm6, %vm967_vm14 }
 0x153   : > { %v920_v11 = vmul.f32 0.5, %v888_v40  ;;  %v921_v22 = vmul.f32 0.5, %v889_v63  ;;  %v922_v23 = vmul.f32 0.5, %v890_v0  ;;  %v892_v31 = vsub.f32 %v828_v6, %v860_v2  ;;  %vm1915_vm5 = vmor %vm960_vm7, %vm968_vm15 }
 0x154   : > { %v923_v26 = vmul.f32 0.5, %v891_v1  ;;  %v950_v30 = vadd.f32 %v918_v4, %v854_v46  ;;  %v951_v12 = vadd.f32 %v919_v5, %v855_v47  ;;  %v893_v24 = vsub.f32 %v829_v7, %v861_v3  ;;  %vm1923_vm6 = vmor %vm961_vm8, %vm969_vm0 }
 0x155   : > { %v952_v35 = vadd.f32 %v920_v11, %v856_v48  ;;  %v953_v13 = vadd.f32 %v921_v22, %v857_v53  ;;  %v954_v36 = vadd.f32 %v922_v23, %v858_v54  ;;  %v924_v16 = vmul.f32 0.5, %v892_v31  ;;  %vm1931_vm7 = vmor %vm962_vm9, %vm970_vm1 }
 0x156   : > { %v955_v25 = vadd.f32 %v923_v26, %v859_v55  ;;  %vm982_vm13 = vcmp.ge.f32.partialorder %v950_v30, 1.0  ;;  %vm2074_vm14 = vcmp.ge.f32.partialorder %v951_v12, 1.0  ;;  %v925_v28 = vmul.f32 0.5, %v893_v24 }
 0x157   : > { %v2087_v41 = vmov 0  ;;  %v1014_v46 = vsel %vm982_vm13, 0.0, %v950_v30  ;;  %v1015_v17 = vsel %vm2074_vm14, 0.0, %v951_v12  ;;  %vm2076_vm15 = vcmp.ge.f32.partialorder %v952_v35, 1.0  ;;  %vm1938_vm0 = vmor %vm974_vm12, %vm982_vm13 }
 0x158   : > { %v2088_v41 = vsel %vm1931_vm7, 4294967295, %v2087_v41  ;;  %vm2075_vm8 = vcmp.ge.f32.partialorder %v953_v13, 1.0  ;;  %vm2091_vm10 = vcmp.ge.f32.partialorder %v1793_v19, 1.0  ;;  %vm2092_vm3 = vcmp.ge.f32.partialorder %v1739_v33, 1.0  ;;  %vm1071_vm14 = vmor %vm1899_vm11, %vm1938_vm0 }
 0x159   : > { %vm1946_vm4 = vmor %vm2092_vm3, %vm2091_vm10  ;;  %v2093_v32 = vmov 0  ;;  %vm2095_vm9 = vcmask 261120   ;;  %v1016_v18 = vsel %vm2076_vm15, 0.0, %v952_v35  ;;  %v1017_v8 = vsel %vm2075_vm8, 0.0, %v953_v13 }
 0x15a   : > { %v2094_v32 = vsel %vm1946_vm4, 4294967295, %v2093_v32  ;;  %1047 = vst.msk [vmem:[#allocation2 + $0xc0] sm:$0xff] %vm2095_vm9, %v1014_v46  ;;  %vm2096_vm1 = vmmov %vm2095_vm9  ;;  %vm2078_vm12 = vcmp.ge.f32.partialorder %v954_v36, 1.0  ;;  %vm2077_vm13 = vcmp.ge.f32.partialorder %v955_v25, 1.0  ;;  %v956_v47 = vadd.f32 %v924_v16, %v860_v2 }
 0x15b   : > { %1048 = vst.msk [vmem:[#allocation2 + $0xc8] sm:$0xff] %vm2096_vm1, %v1015_v17  ;;  %vm2097_vm7 = vmmov %vm2096_vm1  ;;  %v1018_v33 = vsel %vm2078_vm12, 0.0, %v954_v36  ;;  %v1019_v19 = vsel %vm2077_vm13, 0.0, %v955_v25  ;;  %v957_v48 = vadd.f32 %v925_v28, %v861_v3  ;;  %vm2099_vm3 = vcmp.ge.f32.partialorder %v951_v12, 1.0 }
 0x15c   : > { %1049 = vst.msk [vmem:[#allocation2 + $0xd0] sm:$0xff] %vm2097_vm7, %v1016_v18  ;;  %vm2098_vm10 = vmmov %vm2096_vm1  ;;  %vm2100_vm9 = vcmp.ge.f32.partialorder %v1841_v9, 1.0  ;;  %vm2101_vm8 = vcmp.ge.f32.partialorder %v1823_v37, 1.0  ;;  %vm2102_vm15 = vcmp.ge.f32.partialorder %v1767_v44, 1.0  ;;  %v1494_v50 = vmov 0.0  }
 0x15d   : > { %1050 = vst.msk [vmem:[#allocation2 + $0xd8] sm:$0xff] %vm2098_vm10, %v1017_v8  ;;  %vm1064_vm1 = vmor %vm2100_vm9, %vm2099_vm3  ;;  %v1274_v51 = vsel %vm1071_vm14, 1.0, %v1494_v50  ;;  %vm1127_vm0 = vcmask 257024   ;;  %vm988_vm3 = vcmp.ge.f32.partialorder %v956_v47, 1.0  ;;  %vm989_vm9 = vcmp.ge.f32.partialorder %v957_v48, 1.0 }
 0x15e   : > { %vm1969_vm4 = vmor %vm2102_vm15, %vm2101_vm8  ;;  %1052 = vst.msk [vmem:[#allocation2 + $0xe8] sm:$0xff] %vm2097_vm7, %v1019_v19  ;;  %v1293_v37 = vpack.c.bf16 %v1274_v51, %v1274_v51  ;;  %vm2106_vm15 = vcmp.ge.f32.partialorder %v952_v35, 1.0  ;;  %vm2107_vm8 = vcmp.ge.f32.partialorder %v1843_v14, 1.0  ;;  %v1020_v52 = vsel %vm988_vm3, 0.0, %v956_v47 }
 0x15f   : > { %vm2105_vm11 = vmmov %vm2097_vm7  ;;  %vm2109_vm7 = vcmp.ge.f32.partialorder %v1769_v45, 1.0  ;;  %v1021_v53 = vsel %vm989_vm9, 0.0, %v957_v48  ;;  %vm2112_vm14 = vcmask 261120  }
 0x160   : > { %1051 = vst.msk [vmem:[#allocation2 + $0xe0] sm:$0xff] %vm2105_vm11, %v1018_v33  ;;  %vm1072_vm10 = vmor %vm1907_vm2, %vm1064_vm1  ;;  %vm2108_vm11 = vcmp.ge.f32.partialorder %v1825_v38, 1.0 }
 0x161   : > { %v1275_v44 = vsel %vm1072_vm10, 1.0, %v1494_v50  ;;  %vm1065_vm13 = vmor %vm2107_vm8, %vm2106_vm15  ;;  %1053 = vst.msk [vmem:[#allocation2 + $0xf0] sm:$0xff] %vm2112_vm14, %v1020_v52  ;;  %vm2114_vm10 = vcmp.ge.f32.partialorder %v953_v13, 1.0  ;;  %vm2115_vm15 = vcmp.ge.f32.partialorder %v1845_v15, 1.0 }
 0x162   : > { %vm1984_vm12 = vmor %vm2109_vm7, %vm2108_vm11  ;;  %v1294_v54 = vpack.c.bf16 %v1275_v44, %v1275_v44  ;;  %1128 = vst.msk [vmem:[%s1599_s22] sm:$0xf] %vm1127_vm0, %v1293_v37 }
 0x163   : > { %vm1073_vm2 = vmor %vm1915_vm5, %vm1065_vm13  ;;  %vm2116_vm5 = vcmp.ge.f32.partialorder %v954_v36, 1.0  ;;  %vm2117_vm13 = vcmp.ge.f32.partialorder %v1847_v20, 1.0 }
 0x164   : > { %vm2113_vm1 = vmmov %vm2112_vm14  ;;  %v1276_v45 = vsel %vm1073_vm2, 1.0, %v1494_v50  ;;  %1129 = vst.msk [vmem:[%s1599_s22 + $0x4] sm:$0xf] %vm1127_vm0, %v1294_v54  ;;  %vm2118_vm2 = vnez %v2088_v41 }
 0x165   : > { %1054 = vst.msk [vmem:[#allocation2 + $0xf8] sm:$0xff] %vm2113_vm1, %v1021_v53  ;;  %vm1066_vm8 = vmor %vm2115_vm15, %vm2114_vm10  ;;  %v1295_v38 = vpack.c.bf16 %v1276_v45, %v1276_v45  ;;  %vm2119_vm1 = vcmp.ge.f32.partialorder %v955_v25, 1.0  ;;  %vm2120_vm10 = vcmp.ge.f32.partialorder %v1849_v21, 1.0 }
 0x166   : > { %vm1074_vm11 = vmor %vm1923_vm6, %vm1066_vm8  ;;  %vm2121_vm6 = vnez %v2094_v32 }
 0x167   : > { %v1277_v14 = vsel %vm1074_vm11, 1.0, %v1494_v50  ;;  %vm1067_vm7 = vmor %vm2117_vm13, %vm2116_vm5  ;;  %1130 = vst.msk [vmem:[%s1599_s22 + $0x8] sm:$0xf] %vm1127_vm0, %v1295_v38  ;;  %vm2122_vm11 = vcmp.ge.f32.partialorder %v1879_v42, 1.0 }
 0x168   : > { %v1296_v55 = vpack.c.bf16 %v1277_v14, %v1277_v14  ;;  %vm1075_vm14 = vmor %vm2118_vm2, %vm1067_vm7  ;;  %vm2123_vm7 = vcmp.ge.f32.partialorder %v1881_v43, 1.0 }
 0x169   : > { %v1278_v15 = vsel %vm1075_vm14, 1.0, %v1494_v50  ;;  %vm1068_vm15 = vmor %vm2120_vm10, %vm2119_vm1 }
 0x16a   : > { %1131 = vst.msk [vmem:[%s1599_s22 + $0xc] sm:$0xf] %vm1127_vm0, %v1296_v55  ;;  %v1297_v56 = vpack.c.bf16 %v1278_v15, %v1278_v15  ;;  %vm1076_vm8 = vmor %vm2121_vm6, %vm1068_vm15 }
 0x16b   : > { %v1279_v20 = vsel %vm1076_vm8, 1.0, %v1494_v50  ;;  %vm1069_vm5 = vmor %vm2122_vm11, %vm988_vm3 }
 0x16c   : > { %1132 = vst.msk [vmem:[%s1599_s22 + $0x10] sm:$0xf] %vm1127_vm0, %v1297_v56  ;;  %v1298_v57 = vpack.c.bf16 %v1279_v20, %v1279_v20  ;;  %vm1077_vm13 = vmor %vm1969_vm4, %vm1069_vm5 }
 0x16d   : > { %v1280_v21 = vsel %vm1077_vm13, 1.0, %v1494_v50  ;;  %vm1070_vm2 = vmor %vm2123_vm7, %vm989_vm9 }
 0x16e   : > { %1133 = vst.msk [vmem:[%s1599_s22 + $0x14] sm:$0xf] %vm1127_vm0, %v1298_v57  ;;  %v1299_v58 = vpack.c.bf16 %v1280_v21, %v1280_v21  ;;  %vm1078_vm14 = vmor %vm1984_vm12, %vm1070_vm2 }
 0x16f   : > { %v1281_v59 = vsel %vm1078_vm14, 1.0, %v1494_v50 }
 0x170   : > { %1134 = vst.msk [vmem:[%s1599_s22 + $0x18] sm:$0xf] %vm1127_vm0, %v1299_v58  ;;  %v1300_v42 = vpack.c.bf16 %v1281_v59, %v1281_v59 }
 0x172   : > { %1135 = vst.msk [vmem:[%s1599_s22 + $0x1c] sm:$0xf] %vm1127_vm0, %v1300_v42 }
 0x173 PF: > { %s13_s18 = sadd.s32 1, %s1490_s18   ;;  %s2124_s12 = smov %s1470_s13 }
 0x174   : > { %p10_p13 = scmp.ge.s32.totalorder %s13_s18, 18   ;;  %s2125_s13 = smov %s1564_s23 }
 0x175   : > { %s2126_s14 = smov %s1482_s16  ;;  %s2127_s15 = smov %s1486_s17 }
 0x176   : > { %s2128_s16 = smov %s2131_s19  ;;  %s2129_s17 = smov %s2135_s20 }
 0x177   :  { %12 = sbr.rel (!%p10_p13) target bundleno = 4 (0x4), region = 112 }

// kernel: cnn_forward.4
= control target key start
LH: loop header
LB: loop body
LE: loop exit
PB: predicated region body
PF: predicated region fallthrough
CT: control target
= control target key end

     0   :  { %s1136_s12 = smov 0   ;;  %s1138_s13 = smov 0   ;;  %s1362_s0 = inlined_call_operand.vmem [shape: bf16[8,4,32,288], index: 0, kind: input, shape index: {}]   ;;  %s1363_s1 = inlined_call_operand.vmem [shape: bf16[288,32], index: 1, kind: input, shape index: {}]   ;;  %s1364_s2 = inlined_call_operand.vmem [shape: f32[1,32], index: 2, kind: input, shape index: {}]   ;;  %s1365_s3 = inlined_call_operand.vmem [shape: bf16[8,32,32], index: 3, kind: output, shape index: {}]  }
   0x1   :  { %s1140_s14 = smov 0   ;;  %s1142_s15 = smov 0  }
   0x2   :  { %s1144_s16 = smov 0   ;;  %s1146_s17 = smov 0  }
   0x3   :  { %s1148_s18 = smov 0  }
   0x4 LB: > { %s22_s19 = sadd.s32 1, %s1104_s16  ;;  %s25_s20 = sadd.s32 1, %s1108_s17  ;;  %s1112_s18 = sphi %s1148_s18, %s13_s18   ;;  %s1108_s17 = sphi %s1146_s17, %s1375_s17   ;;  %s1104_s16 = sphi %s1144_s16, %s1374_s16   ;;  %s1100_s15 = sphi %s1142_s15, %s1373_s15   ;;  %s1096_s14 = sphi %s1140_s14, %s1372_s14   ;;  %s1092_s13 = sphi %s1138_s13, %s1371_s13   ;;  %s1088_s12 = sphi %s1136_s12, %s1370_s12  }
   0x5   : > { %p23_p0 = scmp.ge.s32.totalorder %s22_s19, 8  ;;  %p41_p1 = scmp.ne.s32.totalorder %s1092_s13, %s1088_s12 }
   0x6   : > { %p42_p2 = scmp.eq.s32.totalorder %s1112_s18, 0  ;;  %s34_s24 = sadd.s32 1, %s1092_s13 }
   0x7   : > { %s1377_s19 = smov (%p23_p0, %s22_s19), 0  ;;  %s1379_s20 = smov (!%p23_p0, %s25_s20), %s1108_s17 }
   0x8   : > { %p43_p3 = por %p42_p2, %p41_p1  ;;  %p27_p4 = scmp.ge.s32.totalorder %s1379_s20, 2 }
   0x9   : > { %s29_s21 = ssub.s32 %s1104_s16, %s1377_s19  ;;  %p820_p6 = scmp.ge.s32.totalorder %s1112_s18, 16 }
   0xa   : > { %s1381_s20 = smov (%p27_p4, %s1379_s20), 0 }
   0xb   : > { %s30_s22 = ssub.s32 %s1108_s17, %s1381_s20  ;;  %143 = sbr.rel (%p820_p6) target bundleno = 36 (0x24), region = 24 }
   0xc   : > { %s31_s23 = sor.u32 %s30_s22, %s29_s21 }
   0xd   : > { %p32_p5 = scmp.eq.s32.totalorder %s31_s23, 0 }
   0xf   : > { %s1187_s25 = scalar_select %p32_p5, %s1092_s13, %s34_s24  }
  0x12   : > { %146 = sbr.rel (!%p43_p3) target bundleno = 36 (0x24), region = 28  ;;  %s148_s26 = sand.u32 (%p43_p3), 1, %s1092_s13  }
  0x13   : > { %s963_s27 = smul.u32 (%p43_p3), 6, %s1108_s17 }
  0x14   : > { %s962_s28 = smul.u32 (%p43_p3), 96, %s148_s26 }
  0x15   : > { %s964_s29 = smul.u32 (%p43_p3), 48, %s1104_s16 }
  0x16   : > { %s150_s8 = scalar_lea.vmem (%p43_p3), [#allocation3], %s962_s28 }
  0x17   : > { %s154_s30 = sadd.s32 (%p43_p3), %s964_s29, %s963_s27 }
  0x18   : > { %s823_s4 = sshll.u32 (%p43_p3), %s154_s30, 2 }
  0x19   : > { %s1196_s7 = scalar_lea.vmem %s1362_s0, %s823_s4 }
  0x1a   : > { %v171_v0 = vld [vmem:[%s1196_s7] sm:$0xff]  ;;  %v173_v1 = vld [vmem:[%s1196_s7 + $0xc] sm:$0xff]  ;;  %v824_v8 = vld [vmem:[%s1196_s7 + $0x8] sm:$0xf] }
  0x1b   : > { %v175_v2 = vld [vmem:[%s1196_s7 + $0x30] sm:$0xff]  ;;  %172 = vst [vmem:[%s150_s8] sm:$0xff] %v171_v0  ;;  %174 = vst [vmem:[%s150_s8 + $0xc] sm:$0xff] %v173_v1  ;;  %v177_v3 = vld [vmem:[%s1196_s7 + $0x3c] sm:$0xff] }
  0x1c   : > { %176 = vst [vmem:[%s150_s8 + $0x18] sm:$0xff] %v175_v2  ;;  %v179_v4 = vld [vmem:[%s1196_s7 + $0x60] sm:$0xff]  ;;  %v181_v5 = vld [vmem:[%s1196_s7 + $0x6c] sm:$0xff]  ;;  %178 = vst [vmem:[%s150_s8 + $0x24] sm:$0xff] %v177_v3 }
  0x1d   : > { %180 = vst [vmem:[%s150_s8 + $0x30] sm:$0xff] %v179_v4  ;;  %182 = vst [vmem:[%s150_s8 + $0x3c] sm:$0xff] %v181_v5  ;;  %v183_v6 = vld [vmem:[%s1196_s7 + $0x90] sm:$0xff]  ;;  %v185_v7 = vld [vmem:[%s1196_s7 + $0x9c] sm:$0xff] }
  0x1e   : > { %184 = vst [vmem:[%s150_s8 + $0x48] sm:$0xff] %v183_v6  ;;  %186 = vst [vmem:[%s150_s8 + $0x54] sm:$0xff] %v185_v7  ;;  %v826_v9 = vld [vmem:[%s1196_s7 + $0x14] sm:$0xf]  ;;  %v828_v10 = vld [vmem:[%s1196_s7 + $0x38] sm:$0xf] }
  0x1f   : > { %825 = vst [vmem:[%s150_s8 + $0x8] sm:$0xf] %v824_v8  ;;  %v830_v11 = vld [vmem:[%s1196_s7 + $0x44] sm:$0xf]  ;;  %827 = vst [vmem:[%s150_s8 + $0x14] sm:$0xf] %v826_v9 }
  0x20   : > { %829 = vst [vmem:[%s150_s8 + $0x20] sm:$0xf] %v828_v10  ;;  %831 = vst [vmem:[%s150_s8 + $0x2c] sm:$0xf] %v830_v11  ;;  %v832_v12 = vld [vmem:[%s1196_s7 + $0x68] sm:$0xf] }
  0x21   : > { %v834_v13 = vld [vmem:[%s1196_s7 + $0x74] sm:$0xf]  ;;  %v836_v14 = vld [vmem:[%s1196_s7 + $0x98] sm:$0xf]  ;;  %833 = vst [vmem:[%s150_s8 + $0x38] sm:$0xf] %v832_v12 }
  0x22   : > { %835 = vst [vmem:[%s150_s8 + $0x44] sm:$0xf] %v834_v13  ;;  %837 = vst [vmem:[%s150_s8 + $0x50] sm:$0xf] %v836_v14  ;;  %v838_v15 = vld [vmem:[%s1196_s7 + $0xa4] sm:$0xf] }
  0x23   : > { %839 = vst [vmem:[%s150_s8 + $0x5c] sm:$0xf] %v838_v15 }
  0x24 PF: > { %p840_p7 = scmp.ge.s32.totalorder %s1112_s18, 1  ;;  %p214_p8 = scmp.lt.s32.totalorder %s1112_s18, 17 }
  0x26   : > { %p215_p9 = pnand %p840_p7, %p214_p8 }
  0x27   : > { %s221_s9 = sand.u32 (!%p215_p9), 1, %s1088_s12   ;;  %s841_s10 = sshll.u32 (!%p215_p9), %s1100_s15, 1 }
  0x28   : > { %218 = sbr.rel (%p215_p9) target bundleno = 339 (0x153), region = 54  ;;  %p250_p10 = scmp.lt.s32.totalorder (!%p215_p9), %s1096_s14, 7 }
  0x29   : > { %s965_s11 = smul.u32 (!%p215_p9), 96, %s221_s9  ;;  %p252_p11 = scmp.lt.s32.totalorder (!%p215_p9), %s841_s10, 3 }
  0x2a   : > { %p844_p12 = scmp.ne.s32.totalorder (!%p215_p9), %s1096_s14, 0 }
  0x2b   : > { %s1225_s29 = scalar_lea.vmem (!%p215_p9), [#allocation3], %s965_s11 }
  0x2f   : > { %s251_s21 = scalar_select %p250_p10, %s1096_s14, 7 }
  0x30   : > { %s1383_s10 = smov (!%p252_p11, %s841_s10), 3  ;;  %263 = sbr.rel (%p844_p12) target bundleno = 55 (0x37), region = 62 }
  0x31   : > { %s842_s22 = sshll.u32 %s251_s21, 2  ;;  %vm264_vm0 = vcmask (!%p844_p12), 261120   ;;  %v1114_v16 = vmov (!%p844_p12), 0.0  }
  0x32   : > { %s255_s23 = sadd.s32 %s842_s22, %s1383_s10  ;;  %265 = vst.msk [vmem:[#allocation2] sm:$0xff] (!%p844_p12), %vm264_vm0, %v1114_v16  ;;  %266 = vst.msk [vmem:[#allocation2 + $0x8] sm:$0xff] (!%p844_p12), %vm264_vm0, %v1114_v16 }
  0x33   : > { %s843_s24 = sshll.u32 %s255_s23, 2  ;;  %267 = vst.msk [vmem:[#allocation2 + $0x10] sm:$0xff] (!%p844_p12), %vm264_vm0, %v1114_v16  ;;  %268 = vst.msk [vmem:[#allocation2 + $0x18] sm:$0xff] (!%p844_p12), %vm264_vm0, %v1114_v16 }
  0x34   : > { %s1223_s28 = scalar_lea.vmem %s1365_s3, %s843_s24  ;;  %269 = vst.msk [vmem:[#allocation2 + $0x20] sm:$0xff] (!%p844_p12), %vm264_vm0, %v1114_v16  ;;  %270 = vst.msk [vmem:[#allocation2 + $0x28] sm:$0xff] (!%p844_p12), %vm264_vm0, %v1114_v16 }
  0x35   : > { %271 = vst.msk [vmem:[#allocation2 + $0x30] sm:$0xff] (!%p844_p12), %vm264_vm0, %v1114_v16  ;;  %272 = vst.msk [vmem:[#allocation2 + $0x38] sm:$0xff] (!%p844_p12), %vm264_vm0, %v1114_v16 }
  0x37 PF: > { %v1024_v17 = vld [vmem:[%s1363_s1 + $0x40] sm:$0xff]   ;;  %v1026_v19 = vld [vmem:[%s1363_s1 + $0x48] sm:$0xff]   ;;  %v1028_v21 = vld [vmem:[%s1363_s1 + $0x50] sm:$0xff]   ;;  %vm500_vm1 = vcmask 261120   ;;  %vm717_vm14 = vcmask 257024  }
  0x38   : > { %v1025_v18 = vld [vmem:[%s1363_s1] sm:$0xff]   ;;  %888 = vmatprep.subr.bf16.mxu0 %v1024_v17  ;;  %946 = vmatprep.subr.bf16.mxu1 %v1024_v17  ;;  %v1027_v20 = vld [vmem:[%s1363_s1 + $0x8] sm:$0xff]   ;;  %v1029_v22 = vld [vmem:[%s1363_s1 + $0x10] sm:$0xff]  }
  0x39   : > { %889 = vmatpush3.bf16.msra.mxu0 %v1025_v18  ;;  %954 = vmatpush3.bf16.msra.mxu1 %v1025_v18  ;;  %v1030_v23 = vld [vmem:[%s1363_s1 + $0x58] sm:$0xff]   ;;  %v1032_v25 = vld [vmem:[%s1363_s1 + $0x60] sm:$0xff]   ;;  %v1034_v27 = vld [vmem:[%s1363_s1 + $0x68] sm:$0xff]  }
  0x3a   : > { %890 = vmatprep.subr.bf16.mxu0 %v1026_v19  ;;  %947 = vmatprep.subr.bf16.mxu1 %v1026_v19  ;;  %v1031_v24 = vld [vmem:[%s1363_s1 + $0x18] sm:$0xff]   ;;  %v1033_v26 = vld [vmem:[%s1363_s1 + $0x20] sm:$0xff]   ;;  %v1035_v30 = vld [vmem:[%s1363_s1 + $0x28] sm:$0xff]  }
  0x3b   : > { %v1042_v28 = vld [vmem:[%s1225_s29 + $0x4] ss:$12 sps:$4 sm:$0xff]   ;;  %v1045_v29 = vld [vmem:[%s1225_s29 + $0x4c] ss:$12 sps:$4 sm:$0xff]   ;;  %v1043_v37 = vld [vmem:[%s1225_s29 + $0x48] ss:$12 sps:$4 sm:$0xff]  }
  0x3c   : > { %v1036_v31 = vld [vmem:[%s1363_s1 + $0x70] sm:$0xff]   ;;  %545 = vmatprep.mubr.bf16.mxu0 %v1042_v28  ;;  %569 = vmatprep.mubr.bf16.mxu1 %v1045_v29  ;;  %v1038_v33 = vld [vmem:[%s1363_s1 + $0x78] sm:$0xff]   ;;  %v1046_v35 = vld [vmem:[%s1363_s1 + $0x80] sm:$0xff]  }
  0x3d   : > { %891 = vmatpush3.bf16.msra.mxu0 %v1027_v20  ;;  %955 = vmatpush3.bf16.msra.mxu1 %v1027_v20  ;;  %v1037_v32 = vld [vmem:[%s1363_s1 + $0x30] sm:$0xff]   ;;  %v1039_v34 = vld [vmem:[%s1363_s1 + $0x38] sm:$0xff]   ;;  %v1040_v36 = vld [vmem:[%s1225_s29] ss:$12 sps:$4 sm:$0xff]  }
  0x3e   : > { %892 = vmatprep.subr.bf16.mxu0 %v1028_v21  ;;  %948 = vmatprep.subr.bf16.mxu1 %v1028_v21  ;;  %v1048_v38 = vld [vmem:[%s1225_s29 + $0x1c] ss:$12 sps:$4 sm:$0xff]   ;;  %v1051_v41 = vld [vmem:[%s1225_s29 + $0x18] ss:$12 sps:$4 sm:$0xff]   ;;  %v1052_v42 = vld [vmem:[%s1225_s29 + $0x20] ss:$12 sps:$4 sm:$0xff]  }
  0x3f   : > { %v1047_v39 = vld [vmem:[%s1363_s1 + $0x88] sm:$0xff]   ;;  %v1053_v43 = vld [vmem:[%s1225_s29 + $0x34] ss:$12 sps:$4 sm:$0xff]   ;;  %v1055_v44 = vld [vmem:[%s1225_s29 + $0x38] ss:$12 sps:$4 sm:$0xff]  }
  0x40   : > { %v1050_v40 = vld [vmem:[%s1225_s29 + $0x8] ss:$12 sps:$4 sm:$0xff]   ;;  %v1056_v45 = vld [vmem:[%s1225_s29 + $0x30] ss:$12 sps:$4 sm:$0xff]   ;;  %v1301_v59 = vld [vmem:[%s1364_s2] ss:$0 sm:$0xff] }
  0x41   : > { %893 = vmatpush3.bf16.msra.mxu0 %v1029_v22  ;;  %956 = vmatpush3.bf16.msra.mxu1 %v1029_v22  ;;  %v1057_v46 = vld [vmem:[%s1225_s29 + $0x50] ss:$12 sps:$4 sm:$0xff]   ;;  %v643_v1 = vld [vmem:[#allocation2] sm:$0xff]  ;;  %v644_v9 = vld [vmem:[#allocation2 + $0x8] sm:$0xff] }
  0x42   : > { %894 = vmatprep.subr.bf16.mxu0 %v1030_v23  ;;  %949 = vmatprep.subr.bf16.mxu1 %v1030_v23  ;;  %v645_v14 = vld [vmem:[#allocation2 + $0x10] sm:$0xff]  ;;  %v646_v19 = vld [vmem:[#allocation2 + $0x18] sm:$0xff] }
  0x45   : > { %895 = vmatpush3.bf16.msra.mxu0 %v1031_v24  ;;  %957 = vmatpush3.bf16.msra.mxu1 %v1031_v24 }
  0x46   : > { %896 = vmatprep.subr.bf16.mxu0 %v1032_v25  ;;  %950 = vmatprep.subr.bf16.mxu1 %v1032_v25 }
  0x49   : > { %897 = vmatpush3.bf16.msra.mxu0 %v1033_v26  ;;  %958 = vmatpush3.bf16.msra.mxu1 %v1033_v26 }
  0x4a   : > { %898 = vmatprep.subr.bf16.mxu0 %v1034_v27  ;;  %951 = vmatprep.subr.bf16.mxu1 %v1034_v27  ;;  %v649_v27 = vld [vmem:[#allocation2 + $0x30] sm:$0xff] }
  0x4d   : > { %899 = vmatpush3.bf16.msra.mxu0 %v1035_v30  ;;  %959 = vmatpush3.bf16.msra.mxu1 %v1035_v30 }
  0x4e   : > { %900 = vmatprep.subr.bf16.mxu0 %v1036_v31  ;;  %952 = vmatprep.subr.bf16.mxu1 %v1036_v31 }
  0x51   : > { %901 = vmatpush3.bf16.msra.mxu0 %v1037_v32  ;;  %960 = vmatpush3.bf16.msra.mxu1 %v1037_v32 }
  0x52   : > { %902 = vmatprep.subr.bf16.mxu0 %v1038_v33  ;;  %953 = vmatprep.subr.bf16.mxu1 %v1038_v33 }
  0x55   : > { %903 = vmatpush3.bf16.msra.mxu0 %v1039_v34  ;;  %961 = vmatpush3.bf16.msra.mxu1 %v1039_v34 }
  0x56   : > { %934 = vmatprep.subr.bf16.mxu1 %v1046_v35 }
  0x58   : > { %546 = vmatmul.mubr.bf16.vlgmr.msra.gmra.mrb[0].mxu0 %v1040_v36  ;;  %570 = vmatmul.mubr.bf16.vlgmr.msra.gmra.mrb[0].mxu1 %v1043_v37  ;;  %v650_v37 = vld [vmem:[#allocation2 + $0x38] sm:$0xff] }
  0x59   : > { %935 = vmatpush3.bf16.msra.mxu1 %v1046_v35  ;;  %553 = vmatprep.mubr.bf16.mxu0 %v1048_v38 }
  0x5a   : > { %936 = vmatprep.subr.bf16.mxu1 %v1047_v39  ;;  %938 = vmatprep.mubr.msk.bf16.mxu1 %vm500_vm1, %v1050_v40 }
  0x5d   : > { %937 = vmatpush3.bf16.msra.mxu1 %v1047_v39 }
  0x60   : > { %554 = vmatmul.mubr.bf16.gmra.mrb[4].mxu0 %v1051_v41  ;;  %939 = vmatmul.mubr.msk.bf16.vlgmr.msra.gmra.mrb[4].mxu1 %vm500_vm1, %v1052_v42 }
  0x61   : > { %561 = vmatprep.mubr.bf16.mxu0 %v1053_v43  ;;  %942 = vmatprep.mubr.msk.bf16.mxu1 %vm500_vm1, %v1055_v44 }
  0x68   : > { %562 = vmatmul.mubr.bf16.gmra.mrb[8].mxu0 %v1056_v45  ;;  %943 = vmatmul.mubr.msk.bf16.gmra.mrb[8].mxu1 %vm500_vm1, %v1057_v46 }
 0x12b   : > { %v904_v47 = vpop.f32.mrb[0].mxu0  ;;  %v922_v48 = vpop.f32.mrb[0].mxu1 }
 0x12c   : > { %v905_v49 = vpop.f32.mrb[1].mxu0  ;;  %v923_v50 = vpop.f32.mrb[1].mxu1 }
 0x12d   : > { %v906_v51 = vadd.f32 %v905_v49, %v904_v47  ;;  %v907_v52 = vpop.f32.mrb[2].mxu0  ;;  %v924_v53 = vadd.f32 %v923_v50, %v922_v48  ;;  %v925_v54 = vpop.f32.mrb[2].mxu1 }
 0x12e   : > { %v908_v55 = vpop.f32.mrb[3].mxu0  ;;  %v926_v56 = vpop.f32.mrb[3].mxu1 }
 0x12f   : > { %v909_v57 = vadd.f32 %v908_v55, %v907_v52  ;;  %v927_v58 = vadd.f32 %v926_v56, %v925_v54  ;;  %v548_v62 = vadd.f32 %v906_v51, %v1301_v59  ;;  %v572_v20 = vadd.f32 %v924_v53, %v1301_v59  ;;  %v647_v52 = vld [vmem:[#allocation2 + $0x20] sm:$0xff] }
 0x131   : > { %v551_v6 = vadd.f32 %v909_v57, %v1301_v59  ;;  %v575_v31 = vadd.f32 %v927_v58, %v1301_v59 }
 0x133   : > { %v910_v60 = vpop.f32.mrb[4].mxu0  ;;  %v940_v61 = vpop.f32.mrb[4].mxu1 }
 0x134   : > { %v911_v63 = vpop.f32.mrb[5].mxu0  ;;  %v612_v0 = vpop.f32.mrb[5].mxu1 }
 0x135   : > { %v912_v2 = vadd.f32 %v911_v63, %v910_v60  ;;  %v613_v3 = vadd.f32 %v612_v0, %v548_v62  ;;  %v913_v4 = vpop.f32.mrb[6].mxu0  ;;  %v941_v5 = vpop.f32.mrb[6].mxu1  ;;  %v648_v60 = vld [vmem:[#allocation2 + $0x28] sm:$0xff] }
 0x136   : > { %v914_v7 = vpop.f32.mrb[7].mxu0  ;;  %v615_v8 = vpop.f32.mrb[7].mxu1 }
 0x137   : > { %v556_v10 = vadd.f32 %v912_v2, %v1301_v59  ;;  %v651_v11 = vsub.f32 %v613_v3, %v643_v1  ;;  %v915_v12 = vadd.f32 %v914_v7, %v913_v4  ;;  %v616_v13 = vadd.f32 %v615_v8, %v551_v6 }
 0x139   : > { %v621_v15 = vadd.f32 %v940_v61, %v556_v10  ;;  %v659_v16 = vmul.f32 0.5, %v651_v11  ;;  %v559_v17 = vadd.f32 %v915_v12, %v1301_v59  ;;  %v652_v18 = vsub.f32 %v616_v13, %v644_v9 }
 0x13a   : > { %v1115_v10 = vmov 0.0  }
 0x13b   : > { %v653_v21 = vsub.f32 %v621_v15, %v645_v14  ;;  %v667_v22 = vadd.f32 %v659_v16, %v643_v1  ;;  %v624_v23 = vadd.f32 %v941_v5, %v559_v17  ;;  %v660_v24 = vmul.f32 0.5, %v652_v18  ;;  %v916_v25 = vpop.f32.mrb[8].mxu0  ;;  %v944_v26 = vpop.f32.mrb[8].mxu1 }
 0x13c   : > { %v637_v28 = vadd.f32 %v944_v26, %v572_v20  ;;  %v917_v29 = vpop.f32.mrb[9].mxu0  ;;  %v628_v30 = vpop.f32.mrb[9].mxu1 }
 0x13d   : > { %v661_v32 = vmul.f32 0.5, %v653_v21  ;;  %vm675_vm2 = vcmp.ge.f32.partialorder %v667_v22, 1.0  ;;  %v654_v33 = vsub.f32 %v624_v23, %v646_v19  ;;  %v668_v34 = vadd.f32 %v660_v24, %v644_v9  ;;  %v919_v35 = vpop.f32.mrb[10].mxu0  ;;  %v945_v36 = vpop.f32.mrb[10].mxu1 }
 0x13e   : > { %v683_v38 = vsel %vm675_vm2, 0.0, %v667_v22  ;;  %v657_v39 = vsub.f32 %v637_v28, %v649_v27  ;;  %v918_v40 = vadd.f32 %v917_v29, %v916_v25  ;;  %v640_v41 = vadd.f32 %v945_v36, %v575_v31  ;;  %v920_v42 = vpop.f32.mrb[11].mxu0  ;;  %v631_v43 = vpop.f32.mrb[11].mxu1 }
 0x13f   : > { %v669_v44 = vadd.f32 %v661_v32, %v645_v14  ;;  %691 = vst.msk [vmem:[#allocation2] sm:$0xff] %vm500_vm1, %v683_v38  ;;  %v662_v45 = vmul.f32 0.5, %v654_v33  ;;  %vm676_vm3 = vcmp.ge.f32.partialorder %v668_v34, 1.0  ;;  %v921_v46 = vadd.f32 %v920_v42, %v919_v35 }
 0x140   : > { %v684_v47 = vsel %vm676_vm3, 0.0, %v668_v34  ;;  %v665_v48 = vmul.f32 0.5, %v657_v39  ;;  %v564_v49 = vadd.f32 %v918_v40, %v1301_v59  ;;  %v658_v50 = vsub.f32 %v640_v41, %v650_v37 }
 0x141   : > { %vm677_vm4 = vcmp.ge.f32.partialorder %v669_v44, 1.0  ;;  %v670_v51 = vadd.f32 %v662_v45, %v646_v19  ;;  %692 = vst.msk [vmem:[#allocation2 + $0x8] sm:$0xff] %vm500_vm1, %v684_v47  ;;  %v567_v53 = vadd.f32 %v921_v46, %v1301_v59 }
 0x142   : > { %v685_v54 = vsel %vm677_vm4, 0.0, %v669_v44  ;;  %vm1316_vm5 = vmor %vm675_vm2, %vm677_vm4  ;;  %v673_v56 = vadd.f32 %v665_v48, %v649_v27  ;;  %v629_v57 = vadd.f32 %v628_v30, %v564_v49  ;;  %v666_v58 = vmul.f32 0.5, %v658_v50 }
 0x143   : > { %693 = vst.msk [vmem:[#allocation2 + $0x10] sm:$0xff] %vm500_vm1, %v685_v54  ;;  %vm678_vm6 = vcmp.ge.f32.partialorder %v670_v51, 1.0  ;;  %v632_v61 = vadd.f32 %v631_v43, %v567_v53 }
 0x144   : > { %v686_v62 = vsel %vm678_vm6, 0.0, %v670_v51  ;;  %vm1322_vm7 = vmor %vm676_vm3, %vm678_vm6  ;;  %vm681_vm8 = vcmp.ge.f32.partialorder %v673_v56, 1.0  ;;  %v655_v59 = vsub.f32 %v629_v57, %v647_v52  ;;  %v674_v0 = vadd.f32 %v666_v58, %v650_v37 }
 0x145   : > { %694 = vst.msk [vmem:[#allocation2 + $0x18] sm:$0xff] %vm500_vm1, %v686_v62  ;;  %v689_v1 = vsel %vm681_vm8, 0.0, %v673_v56  ;;  %v656_v2 = vsub.f32 %v632_v61, %v648_v60 }
 0x146   : > { %697 = vst.msk [vmem:[#allocation2 + $0x30] sm:$0xff] %vm500_vm1, %v689_v1  ;;  %v663_v3 = vmul.f32 0.5, %v655_v59  ;;  %vm682_vm9 = vcmp.ge.f32.partialorder %v674_v0, 1.0 }
 0x147   : > { %v690_v4 = vsel %vm682_vm9, 0.0, %v674_v0  ;;  %v664_v5 = vmul.f32 0.5, %v656_v2 }
 0x148   : > { %v671_v6 = vadd.f32 %v663_v3, %v647_v52  ;;  %698 = vst.msk [vmem:[#allocation2 + $0x38] sm:$0xff] %vm500_vm1, %v690_v4 }
 0x149   : > { %v672_v7 = vadd.f32 %v664_v5, %v648_v60 }
 0x14a   : > { %vm679_vm10 = vcmp.ge.f32.partialorder %v671_v6, 1.0 }
 0x14b   : > { %v687_v8 = vsel %vm679_vm10, 0.0, %v671_v6  ;;  %vm701_vm11 = vmor %vm679_vm10, %vm681_vm8  ;;  %vm680_vm12 = vcmp.ge.f32.partialorder %v672_v7, 1.0 }
 0x14c   : > { %695 = vst.msk [vmem:[#allocation2 + $0x20] sm:$0xff] %vm500_vm1, %v687_v8  ;;  %vm703_vm13 = vmor %vm1316_vm5, %vm701_vm11  ;;  %v688_v9 = vsel %vm680_vm12, 0.0, %v672_v7 }
 0x14d   : > { %v880_v11 = vsel %vm703_vm13, 1.0, %v1115_v10  ;;  %696 = vst.msk [vmem:[#allocation2 + $0x28] sm:$0xff] %vm500_vm1, %v688_v9  ;;  %vm702_vm15 = vmor %vm680_vm12, %vm682_vm9 }
 0x14e   : > { %v886_v12 = vpack.c.bf16 %v880_v11, %v880_v11  ;;  %vm704_vm0 = vmor %vm1322_vm7, %vm702_vm15 }
 0x14f   : > { %v881_v13 = vsel %vm704_vm0, 1.0, %v1115_v10 }
 0x150   : > { %718 = vst.msk [vmem:[%s1223_s28] sm:$0xf] %vm717_vm14, %v886_v12  ;;  %v887_v14 = vpack.c.bf16 %v881_v13, %v881_v13 }
 0x152   : > { %719 = vst.msk [vmem:[%s1223_s28 + $0x4] sm:$0xf] %vm717_vm14, %v887_v14 }
 0x153 PF: > { %s13_s18 = sadd.s32 1, %s1112_s18   ;;  %s1370_s12 = smov %s1092_s13 }
 0x154   : > { %p10_p13 = scmp.ge.s32.totalorder %s13_s18, 18   ;;  %s1371_s13 = smov %s1187_s25 }
 0x155   : > { %s1372_s14 = smov %s1104_s16  ;;  %s1373_s15 = smov %s1108_s17 }
 0x156   : > { %s1374_s16 = smov %s1377_s19  ;;  %s1375_s17 = smov %s1381_s20 }
 0x157   :  { %12 = sbr.rel (!%p10_p13) target bundleno = 4 (0x4), region = 103 }

// kernel: cnn_forward.5
= control target key start
LH: loop header
LB: loop body
LE: loop exit
PB: predicated region body
PF: predicated region fallthrough
CT: control target
= control target key end

     0   :  { %s789_s12 = smov 0   ;;  %s791_s13 = smov 0   ;;  %s917_s0 = inlined_call_operand.vmem [shape: bf16[8,4,8,288], index: 0, kind: input, shape index: {}]   ;;  %s918_s1 = inlined_call_operand.vmem [shape: bf16[288,64], index: 1, kind: input, shape index: {}]   ;;  %s919_s2 = inlined_call_operand.vmem [shape: f32[1,64], index: 2, kind: input, shape index: {}]   ;;  %s920_s3 = inlined_call_operand.vmem [shape: f32[8,64], index: 3, kind: output, shape index: {}]  }
   0x1   :  { %s793_s14 = smov 0  }
   0x2 LB: > { %s22_s15 = sadd.s32 1, %s761_s13  ;;  %p615_p0 = scmp.ge.s32.totalorder %s765_s14, 1  ;;  %s765_s14 = sphi %s793_s14, %s13_s14   ;;  %s761_s13 = sphi %s791_s13, %s924_s13   ;;  %s757_s12 = sphi %s789_s12, %s923_s12  }
   0x3   : > { %p23_p1 = scmp.ge.s32.totalorder %s22_s15, 8  ;;  %p155_p2 = scmp.lt.s32.totalorder %s765_s14, 9 }
   0x5   : > { %s926_s15 = smov (%p23_p1, %s22_s15), 0  ;;  %p156_p3 = pnand %p615_p0, %p155_p2 }
   0x6   : > { %p182_p4 = scmp.lt.s32.totalorder (!%p156_p3), %s757_s12, 7  ;;  %p617_p5 = scmp.ne.s32.totalorder (!%p156_p3), %s757_s12, 0 }
   0x7   : > { %159 = sbr.rel (%p156_p3) target bundleno = 307 (0x133), region = 32 }
   0xe   : > { %s183_s16 = scalar_select %p182_p4, %s757_s12, 7 }
   0xf   : > { %199 = sbr.rel (%p617_p5) target bundleno = 22 (0x16), region = 36  ;;  %vm200_vm0 = vcmask (!%p617_p5), 523264   ;;  %v767_v0 = vmov (!%p617_p5), 0.0  }
  0x10   : > { %s690_s17 = smul.u32 48, %s183_s16  ;;  %201 = vst.msk [vmem:[#allocation2] sm:$0xff] (!%p617_p5), %vm200_vm0, %v767_v0  ;;  %202 = vst.msk [vmem:[#allocation2 + $0x8] sm:$0xff] (!%p617_p5), %vm200_vm0, %v767_v0 }
  0x11   : > { %203 = vst.msk [vmem:[#allocation2 + $0x10] sm:$0xff] (!%p617_p5), %vm200_vm0, %v767_v0  ;;  %204 = vst.msk [vmem:[#allocation2 + $0x18] sm:$0xff] (!%p617_p5), %vm200_vm0, %v767_v0 }
  0x12   : > { %s814_s20 = scalar_lea.vmem %s917_s0, %s690_s17  ;;  %205 = vst.msk [vmem:[%s920_s3] sm:$0xff] (!%p617_p5), %vm200_vm0, %v767_v0 }
  0x16 PF: > { %v717_v1 = vld [vmem:[%s918_s1 + $0x40] sm:$0xff]   ;;  %v719_v3 = vld [vmem:[%s918_s1 + $0x48] sm:$0xff]   ;;  %v721_v5 = vld [vmem:[%s918_s1 + $0x50] sm:$0xff]   ;;  %vm395_vm1 = vcmask 261120   ;;  %vm524_vm2 = vcmask 523264   ;;  %p646_p6 = scmp.ne.s32.totalorder %s757_s12, 7 }
  0x17   : > { %v718_v2 = vld [vmem:[%s918_s1] sm:$0xff]   ;;  %650 = vmatprep.subr.bf16.mxu0 %v717_v1  ;;  %v720_v4 = vld [vmem:[%s918_s1 + $0x8] sm:$0xff]   ;;  %v722_v6 = vld [vmem:[%s918_s1 + $0x10] sm:$0xff]  }
  0x18   : > { %651 = vmatpush3.bf16.msra.mxu0 %v718_v2  ;;  %v723_v7 = vld [vmem:[%s918_s1 + $0x58] sm:$0xff]   ;;  %v725_v9 = vld [vmem:[%s918_s1 + $0x60] sm:$0xff]   ;;  %v727_v12 = vld [vmem:[%s918_s1 + $0x68] sm:$0xff]  }
  0x19   : > { %652 = vmatprep.subr.bf16.mxu0 %v719_v3  ;;  %v724_v8 = vld [vmem:[%s918_s1 + $0x18] sm:$0xff]   ;;  %v726_v10 = vld [vmem:[%s918_s1 + $0x20] sm:$0xff]   ;;  %v728_v13 = vld [vmem:[%s918_s1 + $0x28] sm:$0xff]  }
  0x1a   : > { %v732_v11 = vld [vmem:[%s918_s1 + $0x80] sm:$0xff]   ;;  %v729_v14 = vld [vmem:[%s918_s1 + $0x70] sm:$0xff]   ;;  %v737_v16 = vld [vmem:[%s918_s1 + $0x88] sm:$0xff]  }
  0x1b   : > { %682 = vmatprep.subr.bf16.mxu1 %v732_v11  ;;  %v736_v15 = vld [vmem:[%s814_s20 + $0x4] ss:$12 sps:$4 sm:$0xff]   ;;  %v738_v17 = vld [vmem:[%s814_s20 + $0x8] ss:$12 sps:$4 sm:$0xff]   ;;  %v739_v18 = vld [vmem:[%s814_s20 + $0x20] ss:$12 sps:$4 sm:$0xff]  }
  0x1c   : > { %653 = vmatpush3.bf16.msra.mxu0 %v720_v4  ;;  %683 = vmatpush3.bf16.msra.mxu1 %v732_v11  ;;  %v730_v19 = vld [vmem:[%s918_s1 + $0x30] sm:$0xff]   ;;  %v731_v20 = vld [vmem:[%s918_s1 + $0x78] sm:$0xff]   ;;  %v734_v22 = vld [vmem:[%s814_s20] ss:$12 sps:$4 sm:$0xff]  }
  0x1d   : > { %654 = vmatprep.subr.bf16.mxu0 %v721_v5  ;;  %434 = vmatprep.mubr.bf16.mxu0 %v736_v15  ;;  %v733_v21 = vld [vmem:[%s918_s1 + $0x38] sm:$0xff]   ;;  %v618_v31 = vld [vmem:[%s919_s2] ss:$0 sm:$0xff]  ;;  %v501_v40 = vld [vmem:[#allocation2 + $0x8] sm:$0xff] }
  0x1e   : > { %684 = vmatprep.subr.bf16.mxu1 %v737_v16  ;;  %686 = vmatprep.mubr.msk.bf16.mxu1 %vm395_vm1, %v738_v17  ;;  %v740_v23 = vld [vmem:[%s814_s20 + $0x1c] ss:$12 sps:$4 sm:$0xff]   ;;  %v742_v24 = vld [vmem:[%s814_s20 + $0x18] ss:$12 sps:$4 sm:$0xff]   ;;  %v502_v54 = vld [vmem:[#allocation2 + $0x10] sm:$0xff] }
  0x1f   : > { %v500_v37 = vld [vmem:[#allocation2] sm:$0xff]  ;;  %v503_v59 = vld [vmem:[#allocation2 + $0x18] sm:$0xff] }
  0x20   : > { %655 = vmatpush3.bf16.msra.mxu0 %v722_v6  ;;  %685 = vmatpush3.bf16.msra.mxu1 %v737_v16 }
  0x21   : > { %656 = vmatprep.subr.bf16.mxu0 %v723_v7  ;;  %v532_v7 = vld [vmem:[%s920_s3] sm:$0xff] }
  0x23   : > { %687 = vmatmul.mubr.msk.bf16.vlgmr.msra.gmra.mrb[0].mxu1 %vm395_vm1, %v739_v18 }
  0x24   : > { %657 = vmatpush3.bf16.msra.mxu0 %v724_v8  ;;  %v768_v8 = vmov 0.0  }
  0x25   : > { %658 = vmatprep.subr.bf16.mxu0 %v725_v9 }
  0x28   : > { %659 = vmatpush3.bf16.msra.mxu0 %v726_v10 }
  0x29   : > { %660 = vmatprep.subr.bf16.mxu0 %v727_v12 }
  0x2c   : > { %661 = vmatpush3.bf16.msra.mxu0 %v728_v13 }
  0x2d   : > { %662 = vmatprep.subr.bf16.mxu0 %v729_v14 }
  0x30   : > { %663 = vmatpush3.bf16.msra.mxu0 %v730_v19 }
  0x31   : > { %664 = vmatprep.subr.bf16.mxu0 %v731_v20 }
  0x34   : > { %665 = vmatpush3.bf16.msra.mxu0 %v733_v21 }
  0x37   : > { %435 = vmatmul.mubr.bf16.vlgmr.msra.gmra.mrb[0].mxu0 %v734_v22 }
  0x38   : > { %442 = vmatprep.mubr.bf16.mxu0 %v740_v23 }
  0x3f   : > { %443 = vmatmul.mubr.bf16.gmra.mrb[4].mxu0 %v742_v24 }
  0xf6   : > { %v688_v25 = vpop.f32.mrb[0].mxu1 }
  0xf7   : > { %v485_v26 = vpop.f32.mrb[1].mxu1 }
  0xf8   : > { %v689_v27 = vpop.f32.mrb[2].mxu1 }
  0xf9   : > { %v488_v28 = vpop.f32.mrb[3].mxu1 }
 0x10a   : > { %v666_v29 = vpop.f32.mrb[0].mxu0 }
 0x10b   : > { %v667_v30 = vpop.f32.mrb[1].mxu0 }
 0x10c   : > { %v668_v32 = vadd.f32 %v667_v30, %v666_v29  ;;  %v669_v33 = vpop.f32.mrb[2].mxu0 }
 0x10d   : > { %v670_v34 = vpop.f32.mrb[3].mxu0 }
 0x10e   : > { %v671_v35 = vadd.f32 %v670_v34, %v669_v33  ;;  %v437_v36 = vadd.f32 %v668_v32, %v618_v31 }
 0x110   : > { %v486_v38 = vadd.f32 %v485_v26, %v437_v36  ;;  %v440_v39 = vadd.f32 %v671_v35, %v618_v31 }
 0x112   : > { %v504_v41 = vsub.f32 %v486_v38, %v500_v37  ;;  %v489_v42 = vadd.f32 %v488_v28, %v440_v39  ;;  %v672_v43 = vpop.f32.mrb[4].mxu0 }
 0x113   : > { %v673_v44 = vpop.f32.mrb[5].mxu0 }
 0x114   : > { %v508_v45 = vmul.f32 0.5, %v504_v41  ;;  %v505_v46 = vsub.f32 %v489_v42, %v501_v40  ;;  %v674_v47 = vadd.f32 %v673_v44, %v672_v43  ;;  %v675_v48 = vpop.f32.mrb[6].mxu0 }
 0x115   : > { %v676_v49 = vpop.f32.mrb[7].mxu0 }
 0x116   : > { %v512_v50 = vadd.f32 %v508_v45, %v500_v37  ;;  %v509_v51 = vmul.f32 0.5, %v505_v46  ;;  %v445_v52 = vadd.f32 %v674_v47, %v618_v31  ;;  %v677_v53 = vadd.f32 %v676_v49, %v675_v48 }
 0x118   : > { %vm516_vm3 = vcmp.ge.f32.partialorder %v512_v50, 1.0  ;;  %v513_v55 = vadd.f32 %v509_v51, %v501_v40  ;;  %v494_v56 = vadd.f32 %v688_v25, %v445_v52  ;;  %v448_v57 = vadd.f32 %v677_v53, %v618_v31 }
 0x119   : > { %v520_v58 = vsel %vm516_vm3, 0.0, %v512_v50 }
 0x11a   : > { %525 = vst.msk [vmem:[#allocation2] sm:$0xff] %vm524_vm2, %v520_v58  ;;  %vm517_vm4 = vcmp.ge.f32.partialorder %v513_v55, 1.0  ;;  %v506_v60 = vsub.f32 %v494_v56, %v502_v54  ;;  %v497_v61 = vadd.f32 %v689_v27, %v448_v57 }
 0x11b   : > { %v521_v62 = vsel %vm517_vm4, 0.0, %v513_v55  ;;  %vm884_vm5 = vmor %vm516_vm3, %vm517_vm4 }
 0x11c   : > { %526 = vst.msk [vmem:[#allocation2 + $0x8] sm:$0xff] %vm524_vm2, %v521_v62  ;;  %v510_v0 = vmul.f32 0.5, %v506_v60  ;;  %v507_v1 = vsub.f32 %v497_v61, %v503_v59 }
 0x11e   : > { %v514_v2 = vadd.f32 %v510_v0, %v502_v54  ;;  %v511_v3 = vmul.f32 0.5, %v507_v1 }
 0x120   : > { %vm518_vm6 = vcmp.ge.f32.partialorder %v514_v2, 1.0  ;;  %v515_v4 = vadd.f32 %v511_v3, %v503_v59 }
 0x121   : > { %v522_v5 = vsel %vm518_vm6, 0.0, %v514_v2 }
 0x122   : > { %527 = vst.msk [vmem:[#allocation2 + $0x10] sm:$0xff] %vm524_vm2, %v522_v5  ;;  %vm519_vm7 = vcmp.ge.f32.partialorder %v515_v4, 1.0  ;;  %540 = sbr.rel (%p646_p6) target bundleno = 307 (0x133), region = 40 }
 0x123   : > { %v523_v6 = vsel %vm519_vm7, 0.0, %v515_v4  ;;  %vm530_vm8 = vmor %vm518_vm6, %vm519_vm7 }
 0x124   : > { %528 = vst.msk [vmem:[#allocation2 + $0x18] sm:$0xff] %vm524_vm2, %v523_v6  ;;  %vm531_vm9 = vmor %vm884_vm5, %vm530_vm8 }
 0x125   : > { %v645_v9 = vsel %vm531_vm9, 1.0, %v768_v8 }
 0x126   : > { %v535_v10 = vadd.f32 %v645_v9, %v532_v7 }
 0x128   : > { %536 = vst.msk [vmem:[%s920_s3] sm:$0xff] %vm524_vm2, %v535_v10 }
 0x12f   : > { %v541_v11 = vld [vmem:[%s920_s3] sm:$0xff] }
 0x130   : > { %v542_v12 = vmul.f32 0.125, %v541_v11 }
 0x132   : > { %543 = vst.msk [vmem:[%s920_s3] sm:$0xff] %vm524_vm2, %v542_v12 }
 0x133 PF: > { %s13_s14 = sadd.s32 1, %s765_s14   ;;  %s923_s12 = smov %s761_s13 }
 0x134   : > { %p10_p7 = scmp.ge.s32.totalorder %s13_s14, 10   ;;  %s924_s13 = smov %s926_s15 }
 0x136   :  { %12 = sbr.rel (!%p10_p7) target bundleno = 2 (0x2), region = 70 }

</bundles_post_ra>
